<compile_context>
chip_gen: v5e
topology: v5e:2x2
jax: 0.10.0
libtpu: 0.0.40
codegen_flags: <defaults>
</compile_context>

<pallas_src>
import math

import jax
import jax.numpy as jnp
import numpy as np
from jax.experimental import pallas as pl
from jax.experimental.pallas import tpu as pltpu


def _round_up(n, m):
    return ((n + m - 1) // m) * m


def _pick_block_b(B, S):
    """Fold batch into the block (amortize per-step overhead / raise M) but
    keep >=2 grid steps when possible so both v7x TensorCores get work."""
    divs = [d for d in range(1, B + 1) if B % d == 0 and d * S <= 256]
    if not divs:
        return 1
    multi = [d for d in divs if B // d >= 2]
    return max(multi) if multi else max(divs)


def _encoder_block_kernel(Bb, S, D, Dp, h, d_k, dkp, eps):
    scale = 1.0 / math.sqrt(d_k)
    off_k = h * dkp            # start of the K region in the packed projection
    off_v = 2 * h * dkp        # start of the (V @ W_O) region

    def kernel(x_ref, wbig_ref, bbig_ref, bo_ref,
               w1_ref, b1_ref, w2_ref, b2_ref, ln_ref, o_ref):
        x = x_ref[...]                         # (Bb*S, Dp), native dtype
        cdt = x.dtype                          # MXU operand dtype (no upcast)
        xf = x.astype(jnp.float32)

        # Lane mask selecting the true (unpadded) d_model features.
        lane = jax.lax.broadcasted_iota(jnp.int32, (1, Dp), 1)
        feat = lane < D

        def layernorm(v, a, b):
            # torch semantics: unbiased std (ddof=1), eps added to the std.
            # Pad lanes of v are exactly zero; statistics use true D only.
            mu = jnp.sum(v, axis=-1, keepdims=True) * (1.0 / D)
            xc = jnp.where(feat, v - mu, 0.0)
            var = jnp.sum(xc * xc, axis=-1, keepdims=True) * (1.0 / (D - 1))
            inv = pl.reciprocal(jnp.sqrt(var) + eps, approx=False)
            # a, b are zero on pad lanes -> output pad lanes stay exactly 0.
            return a * xc * inv + b

        # ---------------- residual branch 1: self-attention ----------------
        xn = layernorm(xf, ln_ref[0:1, :], ln_ref[1:2, :]).astype(cdt)

        # One lane-dense packed projection: columns = [Q | K | V @ W_O], each
        # head padded to its own 128-aligned lane tile, so every slice below
        # is tile-aligned and the output projection is already folded in.
        qkv = jnp.dot(xn, wbig_ref[...],
                      preferred_element_type=jnp.float32) + bbig_ref[...]

        attn_rows = []
        for b in range(Bb):                    # static unroll: batches in block
            r0 = b * S
            ctx = None
            for i in range(h):                 # static unroll over heads
                q_i = qkv[r0:r0 + S, i * dkp:(i + 1) * dkp]
                k_i = qkv[r0:r0 + S, off_k + i * dkp:off_k + (i + 1) * dkp]
                v_i = qkv[r0:r0 + S, off_v + i * Dp:off_v + (i + 1) * Dp]
                # scores: contraction over the (zero-padded) head dim; the
                # extra zero lanes contribute exactly 0.
                s = jax.lax.dot_general(
                    q_i.astype(cdt), k_i.astype(cdt),
                    dimension_numbers=(((1,), (1,)), ((), ())),
                    preferred_element_type=jnp.float32) * scale
                # src_mask intentionally ignored (reference masked_fill is a
                # discarded out-of-place op).
                s = s - jnp.max(s, axis=-1, keepdims=True)
                e = jnp.exp(s)
                p = e * pl.reciprocal(jnp.sum(e, axis=-1, keepdims=True),
                                      approx=False)
                # v_i is already (V @ W_O[head i]) -> lane-dense N = Dp.
                c = jnp.dot(p.astype(cdt), v_i.astype(cdt),
                            preferred_element_type=jnp.float32)
                ctx = c if ctx is None else ctx + c
            attn_rows.append(ctx)
        attn = attn_rows[0] if Bb == 1 else jnp.concatenate(attn_rows, axis=0)

        y1 = xf + attn + bo_ref[...]           # residual connection 1

        # ---------------- residual branch 2: feed-forward -------------------
        y1n = layernorm(y1, ln_ref[2:3, :], ln_ref[3:4, :]).astype(cdt)
        hdn = jnp.dot(y1n, w1_ref[...], preferred_element_type=jnp.float32)
        hdn = jnp.maximum(hdn + b1_ref[...], 0.0)              # ReLU
        ffn = jnp.dot(hdn.astype(cdt), w2_ref[...],
                      preferred_element_type=jnp.float32) + b2_ref[...]

        o_ref[...] = (y1 + ffn).astype(o_ref.dtype)            # residual 2

    return kernel


def encoder_block_forward(x, params, src_mask=None, block_b=None):
    """x: (B, S, d_model). src_mask accepted for API parity but has no effect
    (the reference's masked_fill is out-of-place and discarded)."""
    del src_mask
    B, S, D = x.shape
    h = params["h"]
    d_k = D // h
    d_ff = params["w1"].shape[0]
    eps = params["eps"]

    Dp = _round_up(D, 128)            # lane-dense d_model
    Fp = _round_up(d_ff, 128)         # lane-dense d_ff
    dkp = _round_up(d_k, 128)         # per-head 128-aligned tile for Q/K
    Bb = block_b if block_b is not None else _pick_block_b(B, S)
    assert B % Bb == 0

    f32 = jnp.float32
    # nn.Linear computes x @ W.T + b  ->  pre-transpose to (in, out).
    wq_t = params["wq"].astype(f32).T
    wk_t = params["wk"].astype(f32).T
    wv_t = params["wv"].astype(f32).T
    wo_t = params["wo"].astype(f32).T          # rows indexed by concat-head dim

    # Packed projection weight: [Q | K | V @ W_O], every head 128-lane aligned.
    Wq = jnp.zeros((Dp, h * dkp), f32)
    Wk = jnp.zeros((Dp, h * dkp), f32)
    Wvo = jnp.zeros((Dp, h * Dp), f32)
    bq = jnp.zeros((h * dkp,), f32)
    bk = jnp.zeros((h * dkp,), f32)
    bvo = jnp.zeros((h * Dp,), f32)
    for i in range(h):
        sl = slice(i * d_k, (i + 1) * d_k)
        Wq = Wq.at[:D, i * dkp:i * dkp + d_k].set(wq_t[:, sl])
        Wk = Wk.at[:D, i * dkp:i * dkp + d_k].set(wk_t[:, sl])
        bq = bq.at[i * dkp:i * dkp + d_k].set(params["bq"].astype(f32)[sl])
        bk = bk.at[i * dkp:i * dkp + d_k].set(params["bk"].astype(f32)[sl])
        wo_h = wo_t[sl, :]                                    # (d_k, D)
        Wvo = Wvo.at[:D, i * Dp:i * Dp + D].set(wv_t[:, sl] @ wo_h)
        bvo = bvo.at[i * Dp:i * Dp + D].set(params["bv"].astype(f32)[sl] @ wo_h)
    w_big = jnp.concatenate([Wq, Wk, Wvo], axis=1).astype(x.dtype)
    b_big = jnp.concatenate([bq, bk, bvo]).reshape(1, -1)      # f32

    bo = jnp.zeros((1, Dp), f32).at[0, :D].set(params["bo"].astype(f32))
    w1 = jnp.zeros((Dp, Fp), f32).at[:D, :d_ff].set(
        params["w1"].astype(f32).T).astype(x.dtype)
    b1 = jnp.zeros((1, Fp), f32).at[0, :d_ff].set(params["b1"].astype(f32))
    w2 = jnp.zeros((Fp, Dp), f32).at[:d_ff, :D].set(
        params["w2"].astype(f32).T).astype(x.dtype)
    b2 = jnp.zeros((1, Dp), f32).at[0, :D].set(params["b2"].astype(f32))
    ln = jnp.zeros((4, Dp), f32)
    ln = ln.at[0, :D].set(params["ln1_a"].astype(f32))
    ln = ln.at[1, :D].set(params["ln1_b"].astype(f32))
    ln = ln.at[2, :D].set(params["ln2_a"].astype(f32))
    ln = ln.at[3, :D].set(params["ln2_b"].astype(f32))

    # Lane-pad the activations; padded lanes are exactly zero.
    xp = jnp.zeros((B * S, Dp), x.dtype).at[:, :D].set(x.reshape(B * S, D))

    kernel = _encoder_block_kernel(Bb, S, D, Dp, h, d_k, dkp, eps)
    rows = Bb * S
    act_spec = pl.BlockSpec((rows, Dp), lambda i: (i, 0))

    def const_spec(a):
        nd = a.ndim
        return pl.BlockSpec(tuple(a.shape), lambda i, _n=nd: (0,) * _n)

    wtot = int(w_big.shape[1])
    flops = (2 * B * S * (Dp * wtot + Dp * Fp + Fp * Dp)
             + 2 * B * h * (S * S * dkp + S * S * Dp))
    transcendentals = B * h * S * S + 4 * B * S
    consts = (w_big, b_big, bo, w1, b1, w2, b2, ln)
    bytes_accessed = int(2 * xp.size * xp.dtype.itemsize
                         + sum(int(a.size) * a.dtype.itemsize for a in consts))
    cost = pl.CostEstimate(flops=int(flops),
                           transcendentals=int(transcendentals),
                           bytes_accessed=bytes_accessed)

    out = pl.pallas_call(
        kernel,
        out_shape=jax.ShapeDtypeStruct((B * S, Dp), x.dtype),
        grid_spec=pltpu.PrefetchScalarGridSpec(
            num_scalar_prefetch=0,
            grid=(B // Bb,),
            in_specs=[act_spec,
                      const_spec(w_big), const_spec(b_big), const_spec(bo),
                      const_spec(w1), const_spec(b1),
                      const_spec(w2), const_spec(b2), const_spec(ln)],
            out_specs=act_spec),
        compiler_params=pltpu.CompilerParams(
            dimension_semantics=("parallel",),
            vmem_limit_bytes=32 * 1024 * 1024),
        cost_estimate=cost,
    )(xp, w_big, b_big, bo, w1, b1, w2, b2, ln)

    return out[:, :D].reshape(B, S, D)


def encoder_block_reference(x, params, src_mask=None):
    """Pure-JAX reference matching the PyTorch EncoderBlock forward
    (unbiased-std LayerNorm, eps on std, mask no-op, eval-mode dropout)."""
    del src_mask
    B, S, D = x.shape
    h = params["h"]
    d_k = D // h
    eps = params["eps"]

    def layernorm(v, a, b):
        mu = v.mean(-1, keepdims=True)
        std = jnp.sqrt(((v - mu) ** 2).sum(-1, keepdims=True) / (D - 1))
        return a * (v - mu) / (std + eps) + b

    def lin(v, w, b):
        return v @ w.T + b

    def mha(xin):
        Q = lin(xin, params["wq"], params["bq"]).reshape(B, S, h, d_k).transpose(0, 2, 1, 3)
        K = lin(xin, params["wk"], params["bk"]).reshape(B, S, h, d_k).transpose(0, 2, 1, 3)
        V = lin(xin, params["wv"], params["bv"]).reshape(B, S, h, d_k).transpose(0, 2, 1, 3)
        sc = jnp.einsum("bhqd,bhkd->bhqk", Q, K) / math.sqrt(d_k)
        p = jax.nn.softmax(sc, axis=-1)
        ctx = jnp.einsum("bhqk,bhkd->bhqd", p, V).transpose(0, 2, 1, 3).reshape(B, S, D)
        return lin(ctx, params["wo"], params["bo"])

    xn = layernorm(x, params["ln1_a"], params["ln1_b"])
    y1 = x + mha(xn)
    y1n = layernorm(y1, params["ln2_a"], params["ln2_b"])
    ffn = lin(jax.nn.relu(lin(y1n, params["w1"], params["b1"])),
              params["w2"], params["b2"])
    return y1 + ffn


def make_params(key, d_model, h, d_ff):
    """Deterministic PyTorch-style nn.Linear init: U(-1/sqrt(in), 1/sqrt(in)).
    LayerNorm params perturbed from (1, 0) so their paths are exercised."""
    keys = jax.random.split(key, 16)

    def lin_init(kw, kb, out_f, in_f):
        bound = 1.0 / math.sqrt(in_f)
        w = jax.random.uniform(kw, (out_f, in_f), jnp.float32, -bound, bound)
        b = jax.random.uniform(kb, (out_f,), jnp.float32, -bound, bound)
        return w, b

    wq, bq = lin_init(keys[0], keys[1], d_model, d_model)
    wk, bk = lin_init(keys[2], keys[3], d_model, d_model)
    wv, bv = lin_init(keys[4], keys[5], d_model, d_model)
    wo, bo = lin_init(keys[6], keys[7], d_model, d_model)
    w1, b1 = lin_init(keys[8], keys[9], d_ff, d_model)
    w2, b2 = lin_init(keys[10], keys[11], d_model, d_ff)
    return {
        "h": h, "eps": 1e-6,
        "wq": wq, "bq": bq, "wk": wk, "bk": bk, "wv": wv, "bv": bv,
        "wo": wo, "bo": bo,
        "w1": w1, "b1": b1, "w2": w2, "b2": b2,
        "ln1_a": 1.0 + 0.1 * jax.random.normal(keys[12], (d_model,), jnp.float32),
        "ln1_b": 0.1 * jax.random.normal(keys[13], (d_model,), jnp.float32),
        "ln2_a": 1.0 + 0.1 * jax.random.normal(keys[14], (d_model,), jnp.float32),
        "ln2_b": 0.1 * jax.random.normal(keys[15], (d_model,), jnp.float32),
    }


if __name__ == "__main__":
    B, S, d_model, h, d_ff = 2, 8, 32, 4, 64

    root = jax.random.PRNGKey(0)
    kx, kp = jax.random.split(root)
    x = jax.random.normal(kx, (B, S, d_model), jnp.float32)
    params = make_params(kp, d_model, h, d_ff)

    out = jax.block_until_ready(encoder_block_forward(x, params, src_mask=None))
    ref = encoder_block_reference(x, params, src_mask=None)
    np.testing.assert_allclose(np.asarray(out), np.asarray(ref),
                               rtol=1e-4, atol=1e-4)

    print("KERNEL_OK")
</pallas_src>

<mosaic_0001>
module attributes {stable_mosaic.version = 11 : i64} {
  func.func @kernel(%arg0: i32, %arg1: memref<8x128xf32, #tpu.memory_space<vmem>>, %arg2: memref<128x1536xf32, #tpu.memory_space<vmem>>, %arg3: memref<1x1536xf32, #tpu.memory_space<vmem>>, %arg4: memref<1x128xf32, #tpu.memory_space<vmem>>, %arg5: memref<128x128xf32, #tpu.memory_space<vmem>>, %arg6: memref<1x128xf32, #tpu.memory_space<vmem>>, %arg7: memref<128x128xf32, #tpu.memory_space<vmem>>, %arg8: memref<1x128xf32, #tpu.memory_space<vmem>>, %arg9: memref<4x128xf32, #tpu.memory_space<vmem>>, %arg10: memref<8x128xf32, #tpu.memory_space<vmem>>) attributes {dimension_semantics = [#tpu.dimension_semantics<parallel>], iteration_bounds = array<i64: 2>, scalar_prefetch = 0 : i64, scratch_operands = 0 : i64, tpu.core_type = #tpu.core_type<tc>, window_params = [{transform_indices = @transform_0, window_bounds = array<i64: 8, 128>}, {pipeline_mode = #tpu.pipeline_mode<synchronous>, transform_indices = @transform_1, window_bounds = array<i64: 128, 1536>}, {pipeline_mode = #tpu.pipeline_mode<synchronous>, transform_indices = @transform_2, window_bounds = array<i64: 1, 1536>}, {pipeline_mode = #tpu.pipeline_mode<synchronous>, transform_indices = @transform_3, window_bounds = array<i64: 1, 128>}, {pipeline_mode = #tpu.pipeline_mode<synchronous>, transform_indices = @transform_4, window_bounds = array<i64: 128, 128>}, {pipeline_mode = #tpu.pipeline_mode<synchronous>, transform_indices = @transform_5, window_bounds = array<i64: 1, 128>}, {pipeline_mode = #tpu.pipeline_mode<synchronous>, transform_indices = @transform_6, window_bounds = array<i64: 128, 128>}, {pipeline_mode = #tpu.pipeline_mode<synchronous>, transform_indices = @transform_7, window_bounds = array<i64: 1, 128>}, {pipeline_mode = #tpu.pipeline_mode<synchronous>, transform_indices = @transform_8, window_bounds = array<i64: 4, 128>}, {transform_indices = @transform_9, window_bounds = array<i64: 8, 128>}]} {
    %c0 = arith.constant 0 : index
    %c0_0 = arith.constant 0 : index
    %0 = vector.load %arg1[%c0, %c0_0] : memref<8x128xf32, #tpu.memory_space<vmem>>, vector<8x128xf32>
    %1 = tpu.iota {dimensions = array<i32: 1>} : vector<1x128xi32>
    %c32_i32 = arith.constant 32 : i32
    %2 = vector.broadcast %c32_i32 : i32 to vector<1x128xi32>
    %3 = arith.cmpi slt, %1, %2 : vector<1x128xi32>
    %c0_1 = arith.constant 0 : index
    %c0_2 = arith.constant 0 : index
    %4 = vector.load %arg9[%c0_1, %c0_2] : memref<4x128xf32, #tpu.memory_space<vmem>>, vector<1x128xf32>
    %c1 = arith.constant 1 : index
    %c0_3 = arith.constant 0 : index
    %5 = vector.load %arg9[%c1, %c0_3] : memref<4x128xf32, #tpu.memory_space<vmem>>, vector<1x128xf32>
    %cst = arith.constant dense<0.000000e+00> : vector<8xf32>
    %6 = vector.multi_reduction <add>, %0, %cst [1] : vector<8x128xf32> to vector<8xf32>
    %7 = vector.shape_cast %6 : vector<8xf32> to vector<8x1xf32>
    %cst_4 = arith.constant 3.125000e-02 : f32
    %8 = vector.broadcast %cst_4 : f32 to vector<8x1xf32>
    %9 = arith.mulf %7, %8 : vector<8x1xf32>
    %10 = vector.broadcast %9 : vector<8x1xf32> to vector<8x128xf32>
    %11 = arith.subf %0, %10 : vector<8x128xf32>
    %cst_5 = arith.constant 0.000000e+00 : f32
    %12 = vector.shape_cast %3 : vector<1x128xi1> to vector<1x128xi1>
    %13 = vector.broadcast %12 : vector<1x128xi1> to vector<8x128xi1>
    %14 = vector.broadcast %cst_5 : f32 to vector<8x128xf32>
    %15 = arith.select %13, %11, %14 : vector<8x128xi1>, vector<8x128xf32>
    %16 = arith.mulf %15, %15 : vector<8x128xf32>
    %cst_6 = arith.constant dense<0.000000e+00> : vector<8xf32>
    %17 = vector.multi_reduction <add>, %16, %cst_6 [1] : vector<8x128xf32> to vector<8xf32>
    %18 = vector.shape_cast %17 : vector<8xf32> to vector<8x1xf32>
    %cst_7 = arith.constant 0.0322580636 : f32
    %19 = vector.broadcast %cst_7 : f32 to vector<8x1xf32>
    %20 = arith.mulf %18, %19 : vector<8x1xf32>
    %21 = math.sqrt %20 : vector<8x1xf32>
    %cst_8 = arith.constant 9.99999997E-7 : f32
    %22 = vector.broadcast %cst_8 : f32 to vector<8x1xf32>
    %23 = arith.addf %21, %22 : vector<8x1xf32>
    %24 = tpu.reciprocal %23 : vector<8x1xf32> -> vector<8x1xf32>
    %25 = vector.broadcast %4 : vector<1x128xf32> to vector<8x128xf32>
    %26 = arith.mulf %25, %15 : vector<8x128xf32>
    %27 = vector.broadcast %24 : vector<8x1xf32> to vector<8x128xf32>
    %28 = arith.mulf %26, %27 : vector<8x128xf32>
    %29 = vector.broadcast %5 : vector<1x128xf32> to vector<8x128xf32>
    %30 = arith.addf %28, %29 : vector<8x128xf32>
    %c0_9 = arith.constant 0 : index
    %c0_10 = arith.constant 0 : index
    %31 = vector.load %arg2[%c0_9, %c0_10] : memref<128x1536xf32, #tpu.memory_space<vmem>>, vector<128x1536xf32>
    %cst_11 = arith.constant dense<0.000000e+00> : vector<8x1536xf32>
    %32 = tpu.matmul %30, %31, %cst_11 {dimension_numbers = #tpu.dot_dimension_numbers<[1], [0], [0], [1], [0, 0, 1, 1], [], []>} : vector<8x128xf32>, vector<128x1536xf32>, vector<8x1536xf32> -> vector<8x1536xf32>
    %c0_12 = arith.constant 0 : index
    %c0_13 = arith.constant 0 : index
    %33 = vector.load %arg3[%c0_12, %c0_13] : memref<1x1536xf32, #tpu.memory_space<vmem>>, vector<1x1536xf32>
    %34 = vector.broadcast %33 : vector<1x1536xf32> to vector<8x1536xf32>
    %35 = arith.addf %32, %34 : vector<8x1536xf32>
    %36 = vector.extract_strided_slice %35 {offsets = [0, 0], sizes = [8, 128], strides = [1, 1]} : vector<8x1536xf32> to vector<8x128xf32>
    %37 = vector.extract_strided_slice %35 {offsets = [0, 512], sizes = [8, 128], strides = [1, 1]} : vector<8x1536xf32> to vector<8x128xf32>
    %38 = vector.extract_strided_slice %35 {offsets = [0, 1024], sizes = [8, 128], strides = [1, 1]} : vector<8x1536xf32> to vector<8x128xf32>
    %cst_14 = arith.constant dense<0.000000e+00> : vector<8x8xf32>
    %39 = tpu.matmul %36, %37, %cst_14 {dimension_numbers = #tpu.dot_dimension_numbers<[1], [1], [0], [0], [0, 0, 1, 0], [], []>} : vector<8x128xf32>, vector<8x128xf32>, vector<8x8xf32> -> vector<8x8xf32>
    %cst_15 = arith.constant 0.353553385 : f32
    %40 = vector.broadcast %cst_15 : f32 to vector<8x8xf32>
    %41 = arith.mulf %39, %40 : vector<8x8xf32>
    %cst_16 = arith.constant dense<0xFF800000> : vector<8xf32>
    %42 = vector.multi_reduction <maximumf>, %41, %cst_16 [1] : vector<8x8xf32> to vector<8xf32>
    %43 = vector.shape_cast %42 : vector<8xf32> to vector<8x1xf32>
    %44 = vector.broadcast %43 : vector<8x1xf32> to vector<8x8xf32>
    %45 = arith.subf %41, %44 : vector<8x8xf32>
    %46 = math.exp %45 : vector<8x8xf32>
    %cst_17 = arith.constant dense<0.000000e+00> : vector<8xf32>
    %47 = vector.multi_reduction <add>, %46, %cst_17 [1] : vector<8x8xf32> to vector<8xf32>
    %48 = vector.shape_cast %47 : vector<8xf32> to vector<8x1xf32>
    %49 = tpu.reciprocal %48 : vector<8x1xf32> -> vector<8x1xf32>
    %50 = vector.broadcast %49 : vector<8x1xf32> to vector<8x8xf32>
    %51 = arith.mulf %46, %50 : vector<8x8xf32>
    %cst_18 = arith.constant dense<0.000000e+00> : vector<8x128xf32>
    %52 = tpu.matmul %51, %38, %cst_18 {dimension_numbers = #tpu.dot_dimension_numbers<[1], [0], [0], [1], [0, 0, 1, 1], [], []>} : vector<8x8xf32>, vector<8x128xf32>, vector<8x128xf32> -> vector<8x128xf32>
    %53 = vector.extract_strided_slice %35 {offsets = [0, 128], sizes = [8, 128], strides = [1, 1]} : vector<8x1536xf32> to vector<8x128xf32>
    %54 = vector.extract_strided_slice %35 {offsets = [0, 640], sizes = [8, 128], strides = [1, 1]} : vector<8x1536xf32> to vector<8x128xf32>
    %55 = vector.extract_strided_slice %35 {offsets = [0, 1152], sizes = [8, 128], strides = [1, 1]} : vector<8x1536xf32> to vector<8x128xf32>
    %cst_19 = arith.constant dense<0.000000e+00> : vector<8x8xf32>
    %56 = tpu.matmul %53, %54, %cst_19 {dimension_numbers = #tpu.dot_dimension_numbers<[1], [1], [0], [0], [0, 0, 1, 0], [], []>} : vector<8x128xf32>, vector<8x128xf32>, vector<8x8xf32> -> vector<8x8xf32>
    %cst_20 = arith.constant 0.353553385 : f32
    %57 = vector.broadcast %cst_20 : f32 to vector<8x8xf32>
    %58 = arith.mulf %56, %57 : vector<8x8xf32>
    %cst_21 = arith.constant dense<0xFF800000> : vector<8xf32>
    %59 = vector.multi_reduction <maximumf>, %58, %cst_21 [1] : vector<8x8xf32> to vector<8xf32>
    %60 = vector.shape_cast %59 : vector<8xf32> to vector<8x1xf32>
    %61 = vector.broadcast %60 : vector<8x1xf32> to vector<8x8xf32>
    %62 = arith.subf %58, %61 : vector<8x8xf32>
    %63 = math.exp %62 : vector<8x8xf32>
    %cst_22 = arith.constant dense<0.000000e+00> : vector<8xf32>
    %64 = vector.multi_reduction <add>, %63, %cst_22 [1] : vector<8x8xf32> to vector<8xf32>
    %65 = vector.shape_cast %64 : vector<8xf32> to vector<8x1xf32>
    %66 = tpu.reciprocal %65 : vector<8x1xf32> -> vector<8x1xf32>
    %67 = vector.broadcast %66 : vector<8x1xf32> to vector<8x8xf32>
    %68 = arith.mulf %63, %67 : vector<8x8xf32>
    %cst_23 = arith.constant dense<0.000000e+00> : vector<8x128xf32>
    %69 = tpu.matmul %68, %55, %cst_23 {dimension_numbers = #tpu.dot_dimension_numbers<[1], [0], [0], [1], [0, 0, 1, 1], [], []>} : vector<8x8xf32>, vector<8x128xf32>, vector<8x128xf32> -> vector<8x128xf32>
    %70 = arith.addf %52, %69 : vector<8x128xf32>
    %71 = vector.extract_strided_slice %35 {offsets = [0, 256], sizes = [8, 128], strides = [1, 1]} : vector<8x1536xf32> to vector<8x128xf32>
    %72 = vector.extract_strided_slice %35 {offsets = [0, 768], sizes = [8, 128], strides = [1, 1]} : vector<8x1536xf32> to vector<8x128xf32>
    %73 = vector.extract_strided_slice %35 {offsets = [0, 1280], sizes = [8, 128], strides = [1, 1]} : vector<8x1536xf32> to vector<8x128xf32>
    %cst_24 = arith.constant dense<0.000000e+00> : vector<8x8xf32>
    %74 = tpu.matmul %71, %72, %cst_24 {dimension_numbers = #tpu.dot_dimension_numbers<[1], [1], [0], [0], [0, 0, 1, 0], [], []>} : vector<8x128xf32>, vector<8x128xf32>, vector<8x8xf32> -> vector<8x8xf32>
    %cst_25 = arith.constant 0.353553385 : f32
    %75 = vector.broadcast %cst_25 : f32 to vector<8x8xf32>
    %76 = arith.mulf %74, %75 : vector<8x8xf32>
    %cst_26 = arith.constant dense<0xFF800000> : vector<8xf32>
    %77 = vector.multi_reduction <maximumf>, %76, %cst_26 [1] : vector<8x8xf32> to vector<8xf32>
    %78 = vector.shape_cast %77 : vector<8xf32> to vector<8x1xf32>
    %79 = vector.broadcast %78 : vector<8x1xf32> to vector<8x8xf32>
    %80 = arith.subf %76, %79 : vector<8x8xf32>
    %81 = math.exp %80 : vector<8x8xf32>
    %cst_27 = arith.constant dense<0.000000e+00> : vector<8xf32>
    %82 = vector.multi_reduction <add>, %81, %cst_27 [1] : vector<8x8xf32> to vector<8xf32>
    %83 = vector.shape_cast %82 : vector<8xf32> to vector<8x1xf32>
    %84 = tpu.reciprocal %83 : vector<8x1xf32> -> vector<8x1xf32>
    %85 = vector.broadcast %84 : vector<8x1xf32> to vector<8x8xf32>
    %86 = arith.mulf %81, %85 : vector<8x8xf32>
    %cst_28 = arith.constant dense<0.000000e+00> : vector<8x128xf32>
    %87 = tpu.matmul %86, %73, %cst_28 {dimension_numbers = #tpu.dot_dimension_numbers<[1], [0], [0], [1], [0, 0, 1, 1], [], []>} : vector<8x8xf32>, vector<8x128xf32>, vector<8x128xf32> -> vector<8x128xf32>
    %88 = arith.addf %70, %87 : vector<8x128xf32>
    %89 = vector.extract_strided_slice %35 {offsets = [0, 384], sizes = [8, 128], strides = [1, 1]} : vector<8x1536xf32> to vector<8x128xf32>
    %90 = vector.extract_strided_slice %35 {offsets = [0, 896], sizes = [8, 128], strides = [1, 1]} : vector<8x1536xf32> to vector<8x128xf32>
    %91 = vector.extract_strided_slice %35 {offsets = [0, 1408], sizes = [8, 128], strides = [1, 1]} : vector<8x1536xf32> to vector<8x128xf32>
    %cst_29 = arith.constant dense<0.000000e+00> : vector<8x8xf32>
    %92 = tpu.matmul %89, %90, %cst_29 {dimension_numbers = #tpu.dot_dimension_numbers<[1], [1], [0], [0], [0, 0, 1, 0], [], []>} : vector<8x128xf32>, vector<8x128xf32>, vector<8x8xf32> -> vector<8x8xf32>
    %cst_30 = arith.constant 0.353553385 : f32
    %93 = vector.broadcast %cst_30 : f32 to vector<8x8xf32>
    %94 = arith.mulf %92, %93 : vector<8x8xf32>
    %cst_31 = arith.constant dense<0xFF800000> : vector<8xf32>
    %95 = vector.multi_reduction <maximumf>, %94, %cst_31 [1] : vector<8x8xf32> to vector<8xf32>
    %96 = vector.shape_cast %95 : vector<8xf32> to vector<8x1xf32>
    %97 = vector.broadcast %96 : vector<8x1xf32> to vector<8x8xf32>
    %98 = arith.subf %94, %97 : vector<8x8xf32>
    %99 = math.exp %98 : vector<8x8xf32>
    %cst_32 = arith.constant dense<0.000000e+00> : vector<8xf32>
    %100 = vector.multi_reduction <add>, %99, %cst_32 [1] : vector<8x8xf32> to vector<8xf32>
    %101 = vector.shape_cast %100 : vector<8xf32> to vector<8x1xf32>
    %102 = tpu.reciprocal %101 : vector<8x1xf32> -> vector<8x1xf32>
    %103 = vector.broadcast %102 : vector<8x1xf32> to vector<8x8xf32>
    %104 = arith.mulf %99, %103 : vector<8x8xf32>
    %cst_33 = arith.constant dense<0.000000e+00> : vector<8x128xf32>
    %105 = tpu.matmul %104, %91, %cst_33 {dimension_numbers = #tpu.dot_dimension_numbers<[1], [0], [0], [1], [0, 0, 1, 1], [], []>} : vector<8x8xf32>, vector<8x128xf32>, vector<8x128xf32> -> vector<8x128xf32>
    %106 = arith.addf %88, %105 : vector<8x128xf32>
    %107 = arith.addf %0, %106 : vector<8x128xf32>
    %c0_34 = arith.constant 0 : index
    %c0_35 = arith.constant 0 : index
    %108 = vector.load %arg4[%c0_34, %c0_35] : memref<1x128xf32, #tpu.memory_space<vmem>>, vector<1x128xf32>
    %109 = vector.broadcast %108 : vector<1x128xf32> to vector<8x128xf32>
    %110 = arith.addf %107, %109 : vector<8x128xf32>
    %c2 = arith.constant 2 : index
    %c0_36 = arith.constant 0 : index
    %111 = vector.load %arg9[%c2, %c0_36] : memref<4x128xf32, #tpu.memory_space<vmem>>, vector<1x128xf32>
    %c3 = arith.constant 3 : index
    %c0_37 = arith.constant 0 : index
    %112 = vector.load %arg9[%c3, %c0_37] : memref<4x128xf32, #tpu.memory_space<vmem>>, vector<1x128xf32>
    %cst_38 = arith.constant dense<0.000000e+00> : vector<8xf32>
    %113 = vector.multi_reduction <add>, %110, %cst_38 [1] : vector<8x128xf32> to vector<8xf32>
    %114 = vector.shape_cast %113 : vector<8xf32> to vector<8x1xf32>
    %cst_39 = arith.constant 3.125000e-02 : f32
    %115 = vector.broadcast %cst_39 : f32 to vector<8x1xf32>
    %116 = arith.mulf %114, %115 : vector<8x1xf32>
    %117 = vector.broadcast %116 : vector<8x1xf32> to vector<8x128xf32>
    %118 = arith.subf %110, %117 : vector<8x128xf32>
    %cst_40 = arith.constant 0.000000e+00 : f32
    %119 = vector.shape_cast %3 : vector<1x128xi1> to vector<1x128xi1>
    %120 = vector.broadcast %119 : vector<1x128xi1> to vector<8x128xi1>
    %121 = vector.broadcast %cst_40 : f32 to vector<8x128xf32>
    %122 = arith.select %120, %118, %121 : vector<8x128xi1>, vector<8x128xf32>
    %123 = arith.mulf %122, %122 : vector<8x128xf32>
    %cst_41 = arith.constant dense<0.000000e+00> : vector<8xf32>
    %124 = vector.multi_reduction <add>, %123, %cst_41 [1] : vector<8x128xf32> to vector<8xf32>
    %125 = vector.shape_cast %124 : vector<8xf32> to vector<8x1xf32>
    %cst_42 = arith.constant 0.0322580636 : f32
    %126 = vector.broadcast %cst_42 : f32 to vector<8x1xf32>
    %127 = arith.mulf %125, %126 : vector<8x1xf32>
    %128 = math.sqrt %127 : vector<8x1xf32>
    %cst_43 = arith.constant 9.99999997E-7 : f32
    %129 = vector.broadcast %cst_43 : f32 to vector<8x1xf32>
    %130 = arith.addf %128, %129 : vector<8x1xf32>
    %131 = tpu.reciprocal %130 : vector<8x1xf32> -> vector<8x1xf32>
    %132 = vector.broadcast %111 : vector<1x128xf32> to vector<8x128xf32>
    %133 = arith.mulf %132, %122 : vector<8x128xf32>
    %134 = vector.broadcast %131 : vector<8x1xf32> to vector<8x128xf32>
    %135 = arith.mulf %133, %134 : vector<8x128xf32>
    %136 = vector.broadcast %112 : vector<1x128xf32> to vector<8x128xf32>
    %137 = arith.addf %135, %136 : vector<8x128xf32>
    %c0_44 = arith.constant 0 : index
    %c0_45 = arith.constant 0 : index
    %138 = vector.load %arg5[%c0_44, %c0_45] : memref<128x128xf32, #tpu.memory_space<vmem>>, vector<128x128xf32>
    %cst_46 = arith.constant dense<0.000000e+00> : vector<8x128xf32>
    %139 = tpu.matmul %137, %138, %cst_46 {dimension_numbers = #tpu.dot_dimension_numbers<[1], [0], [0], [1], [0, 0, 1, 1], [], []>} : vector<8x128xf32>, vector<128x128xf32>, vector<8x128xf32> -> vector<8x128xf32>
    %c0_47 = arith.constant 0 : index
    %c0_48 = arith.constant 0 : index
    %140 = vector.load %arg6[%c0_47, %c0_48] : memref<1x128xf32, #tpu.memory_space<vmem>>, vector<1x128xf32>
    %141 = vector.broadcast %140 : vector<1x128xf32> to vector<8x128xf32>
    %142 = arith.addf %139, %141 : vector<8x128xf32>
    %cst_49 = arith.constant 0.000000e+00 : f32
    %143 = vector.broadcast %cst_49 : f32 to vector<8x128xf32>
    %144 = arith.maximumf %142, %143 : vector<8x128xf32>
    %c0_50 = arith.constant 0 : index
    %c0_51 = arith.constant 0 : index
    %145 = vector.load %arg7[%c0_50, %c0_51] : memref<128x128xf32, #tpu.memory_space<vmem>>, vector<128x128xf32>
    %cst_52 = arith.constant dense<0.000000e+00> : vector<8x128xf32>
    %146 = tpu.matmul %144, %145, %cst_52 {dimension_numbers = #tpu.dot_dimension_numbers<[1], [0], [0], [1], [0, 0, 1, 1], [], []>} : vector<8x128xf32>, vector<128x128xf32>, vector<8x128xf32> -> vector<8x128xf32>
    %c0_53 = arith.constant 0 : index
    %c0_54 = arith.constant 0 : index
    %147 = vector.load %arg8[%c0_53, %c0_54] : memref<1x128xf32, #tpu.memory_space<vmem>>, vector<1x128xf32>
    %148 = vector.broadcast %147 : vector<1x128xf32> to vector<8x128xf32>
    %149 = arith.addf %146, %148 : vector<8x128xf32>
    %150 = arith.addf %110, %149 : vector<8x128xf32>
    %c0_55 = arith.constant 0 : index
    %c0_56 = arith.constant 0 : index
    %151 = vector.load %arg10[%c0_55, %c0_56] : memref<8x128xf32, #tpu.memory_space<vmem>>, vector<8x128xf32>
    tpu.vector_store %arg10[%c0_55, %c0_56], %150 {strides = array<i32>} : memref<8x128xf32, #tpu.memory_space<vmem>>, vector<8x128xf32>,
    return
  }
  func.func @transform_0(%arg0: i32) -> (i32, i32) {
    %c0_i32 = arith.constant 0 : i32
    %c0_i32_0 = arith.constant 0 : i32
    return %arg0, %c0_i32 : i32, i32
  }
  func.func @transform_1(%arg0: i32) -> (i32, i32) {
    %c0_i32 = arith.constant 0 : i32
    %c0_i32_0 = arith.constant 0 : i32
    %c0_i32_1 = arith.constant 0 : i32
    return %c0_i32, %c0_i32_0 : i32, i32
  }
  func.func @transform_2(%arg0: i32) -> (i32, i32) {
    %c0_i32 = arith.constant 0 : i32
    %c0_i32_0 = arith.constant 0 : i32
    %c0_i32_1 = arith.constant 0 : i32
    return %c0_i32, %c0_i32_0 : i32, i32
  }
  func.func @transform_3(%arg0: i32) -> (i32, i32) {
    %c0_i32 = arith.constant 0 : i32
    %c0_i32_0 = arith.constant 0 : i32
    %c0_i32_1 = arith.constant 0 : i32
    return %c0_i32, %c0_i32_0 : i32, i32
  }
  func.func @transform_4(%arg0: i32) -> (i32, i32) {
    %c0_i32 = arith.constant 0 : i32
    %c0_i32_0 = arith.constant 0 : i32
    %c0_i32_1 = arith.constant 0 : i32
    return %c0_i32, %c0_i32_0 : i32, i32
  }
  func.func @transform_5(%arg0: i32) -> (i32, i32) {
    %c0_i32 = arith.constant 0 : i32
    %c0_i32_0 = arith.constant 0 : i32
    %c0_i32_1 = arith.constant 0 : i32
    return %c0_i32, %c0_i32_0 : i32, i32
  }
  func.func @transform_6(%arg0: i32) -> (i32, i32) {
    %c0_i32 = arith.constant 0 : i32
    %c0_i32_0 = arith.constant 0 : i32
    %c0_i32_1 = arith.constant 0 : i32
    return %c0_i32, %c0_i32_0 : i32, i32
  }
  func.func @transform_7(%arg0: i32) -> (i32, i32) {
    %c0_i32 = arith.constant 0 : i32
    %c0_i32_0 = arith.constant 0 : i32
    %c0_i32_1 = arith.constant 0 : i32
    return %c0_i32, %c0_i32_0 : i32, i32
  }
  func.func @transform_8(%arg0: i32) -> (i32, i32) {
    %c0_i32 = arith.constant 0 : i32
    %c0_i32_0 = arith.constant 0 : i32
    %c0_i32_1 = arith.constant 0 : i32
    return %c0_i32, %c0_i32_0 : i32, i32
  }
  func.func @transform_9(%arg0: i32) -> (i32, i32) {
    %c0_i32 = arith.constant 0 : i32
    %c0_i32_0 = arith.constant 0 : i32
    return %arg0, %c0_i32 : i32, i32
  }
}

</mosaic_0001>

<bundles_post_ra>
// kernel: tpu_custom_call.1
= control target key start
LH: loop header
LB: loop body
LE: loop exit
PB: predicated region body
PF: predicated region fallthrough
CT: control target
= control target key end

     0   :  { %s2167_s0 = inlined_call_operand.hbm [shape: f32[16,128], index: 0, kind: input, shape index: {}]   ;;  %s2168_s1 = inlined_call_operand.hbm [shape: f32[128,1536], index: 1, kind: input, shape index: {}]   ;;  %s2169_s2 = inlined_call_operand.hbm [shape: f32[1,1536], index: 2, kind: input, shape index: {}]   ;;  %s2170_s3 = inlined_call_operand.vmem [shape: f32[1,128], index: 3, kind: input, shape index: {}]   ;;  %s2171_s4 = inlined_call_operand.hbm [shape: f32[128,128], index: 4, kind: input, shape index: {}]   ;;  %s2172_s5 = inlined_call_operand.vmem [shape: f32[1,128], index: 5, kind: input, shape index: {}]   ;;  %s2173_s6 = inlined_call_operand.hbm [shape: f32[128,128], index: 6, kind: input, shape index: {}]   ;;  %s2174_s7 = inlined_call_operand.vmem [shape: f32[1,128], index: 7, kind: input, shape index: {}]   ;;  %s2175_s8 = inlined_call_operand.vmem [shape: f32[4,128], index: 8, kind: input, shape index: {}]   ;;  %s2176_s9 = inlined_call_operand.hbm [shape: f32[16,128], index: 9, kind: output, shape index: {}]  }
   0x1   :  { %2177 = sst [smem:[#allocation16_spill]] %s2168_s1 }
   0x2   :  { %2178 = sst [smem:[#allocation17_spill]] %s2169_s2 }
   0x3   :  { %2179 = sst [smem:[#allocation18_spill]] %s2171_s4 }
   0x4   :  { %2180 = sst [smem:[#allocation19_spill]] %s2173_s6 }
   0x5   :  { %14 = vsyncpa [#allocation3], 0 }
   0x6   :  { %16 = vsyncpa [#allocation3 + $0x1], 0 }
   0x7   :  { %17 = vsyncpa [#allocation6], 0 }
   0x8   :  { %18 = vsyncpa [#allocation9], 0 }
   0x9   :  { %19 = vsyncpa [#allocation4], 0 }
   0xa   :  { %21 = vsyncpa [#allocation4 + $0x1], 0  ;;  %s1885_s30 = smov 0   ;;  %s1887_s10 = smov 0  }
   0xb   :  { %s1889_s11 = smov 0   ;;  %s1891_s12 = smov 0  }
   0xc LB: > { %s2181_s1 = sld [smem:[#allocation16_spill]]  ;;  %s1909_s16 = sadd.s32 4294967295, %s1825_s12   ;;  %s1825_s12 = sphi %s1891_s12, %s2196_s12   ;;  %s1821_s11 = sphi %s1889_s11, %s2195_s11   ;;  %s1817_s10 = sphi %s1887_s10, %s2194_s10   ;;  %s1813_s30 = sphi %s1885_s30, %s2193_s30  }
   0xd   : > { %p1455_p0 = scmp.ge.s32.totalorder %s1825_s12, 1  ;;  %p48_p1 = scmp.eq.s32.totalorder %s1909_s16, 0 }
   0xe   : > { %p252_p2 = scmp.lt.s32.totalorder %s1825_s12, 3  ;;  %s1827_s18 = smov [#allocation5]  }
   0xf   : > { %s265_s19 = sshll.u32 %s1827_s18, 4  ;;  %s2183_s4 = sld [smem:[#allocation18_spill]]  ;;  %s266_s19 = int_to_ptr.vmem [resolvable:$true] %s265_s19 }
  0x10   : > { %p1914_p3 = pnand %p1455_p0, %p252_p2  ;;  %s1828_s24 = smov [#allocation8]  }
  0x11   : > { %s294_s25 = sshll.u32 %s1828_s24, 4  ;;  %s1829_s26 = smov 1536   ;;  %s295_s25 = int_to_ptr.vmem [resolvable:$true] %s294_s25 }
  0x12   : > { %s263_s15 = sshll.u32 %s2181_s1, 4  ;;  %p1498_p4 = pneg %p1914_p3  ;;  %s264_s15 = int_to_ptr.hbm [resolvable:$true] %s263_s15 }
  0x13   : > { %s1830_s27 = smov 96   ;;  %s1831_s28 = smov 128  }
  0x14   : > { %p1926_p6 = pnand %p1498_p4, %p48_p1  ;;  %s1832_s29 = smov 8  }
  0x15   : > { %s292_s22 = sshll.u32 %s2183_s4, 4  ;;  %s2185_s2 = sld [smem:[#allocation17_spill]]  ;;  %s293_s22 = int_to_ptr.hbm [resolvable:$true] %s292_s22 }
  0x16   : > { %1501 = dma.hbm_to_vmem [thread:$0]  (!%p1926_p6), %s264_s15, 24576, %s266_s19, [#allocation6], %s1829_s26, %s1829_s26, %s1830_s27  }
  0x17   : > { %1507 = dma.hbm_to_vmem [thread:$0]  (!%p1926_p6), %s293_s22, 2048, %s295_s25, [#allocation9], %s1831_s28, %s1831_s28, %s1832_s29  }
  0x18   : > { %s1833_s20 = smov [#allocation7]   ;;  %s2186_s6 = sld [smem:[#allocation19_spill]] }
  0x19   : > { %s280_s15 = sshll.u32 %s1833_s20, 4  ;;  %s1834_s22 = smov [#allocation10]   ;;  %s281_s15 = int_to_ptr.vmem [resolvable:$true] %s280_s15 }
  0x1a   : > { %s311_s25 = sshll.u32 %s1834_s22, 4  ;;  %s1454_s26 = sadd.s32 4294967294, %s1825_s12   ;;  %s312_s25 = int_to_ptr.vmem [resolvable:$true] %s311_s25 }
  0x1b   : > { %s278_s18 = sshll.u32 %s2185_s2, 4  ;;  %s1946_s27 = sadd.s32 1, %s1825_s12   ;;  %s279_s18 = int_to_ptr.hbm [resolvable:$true] %s278_s18 }
  0x1c   : > { %1504 = dma.hbm_to_vmem [thread:$0]  (!%p1926_p6), %s279_s18, 192, %s281_s15, [#allocation6]  }
  0x1d   : > { %s31_s13 = ssub.s32 %s1825_s12, %s1946_s27  ;;  %s34_s14 = sadd.s32 1, %s1821_s11 }
  0x1e   : > { %s309_s24 = sshll.u32 %s2186_s6, 4  ;;  %p32_p7 = scmp.eq.s32.totalorder %s31_s13, 0  ;;  %s310_s24 = int_to_ptr.hbm [resolvable:$true] %s309_s24 }
  0x1f   : > { %1510 = dma.hbm_to_vmem [thread:$0]  (!%p1926_p6), %s310_s24, 2048, %s312_s25, [#allocation9], %s1831_s28, %s1831_s28, %s1832_s29  }
  0x20   : > { %p41_p8 = scmp.ne.s32.totalorder %s1821_s11, %s1817_s10  ;;  %p42_p9 = scmp.eq.s32.totalorder %s1825_s12, 0 }
  0x21   : > { %p47_p10 = scmp.ne.s32.totalorder %s1817_s10, %s1813_s30  ;;  %p239_p13 = scmp.eq.s32.totalorder %s1909_s16, 1 }
  0x22   : > { %s1957_s18 = scalar_select %p32_p7, %s1821_s11, %s34_s14  }
  0x23   : > { %p1959_p11 = por %p42_p9, %p41_p8  ;;  %p1965_p12 = por %p48_p1, %p47_p10 }
  0x24   : > { %p245_p0 = scmp.eq.s32.totalorder %s1454_s26, 1  ;;  %p1523_p2 = scmp.lt.s32.totalorder %s1825_s12, 2 }
  0x25   : > { %s331_s28 = sand.u32 1, %s1821_s11   ;;  %p1972_p4 = por %p239_p13, %p41_p8 }
  0x26   : > { %p1976_p6 = por %p245_p0, %p47_p10  ;;  %s1461_s19 = sshll.u32 %s331_s28, 3 }
  0x27   : > { %s1462_s21 = sshll.u32 %s1825_s12, 3  ;;  %s335_s13 = scalar_lea.vmem [#allocation2], %s1461_s19 }
  0x28   : > { %s339_s25 = scalar_lea.hbm %s2167_s0, %s1462_s21  ;;  %s343_s14 = sshll.u32 %s335_s13, 4  ;;  %s344_s14 = int_to_ptr.vmem [resolvable:$true] %s343_s14 }
  0x29   : > { %s341_s1 = sshll.u32 %s339_s25, 4  ;;  %p1986_p7 = pnand %p1523_p2, %p1959_p11  ;;  %s342_s1 = int_to_ptr.hbm [resolvable:$true] %s341_s1 }
  0x2a   : > { %s332_s2 = scalar_lea.sflag [#allocation3], %s331_s28  ;;  %s1721_s4 = sshra.s32 %s342_s1, 4  ;;  %s1722_s4 = int_to_ptr.hbm [resolvable:$true] %s1721_s4 }
  0x2b   : > { %s1723_s6 = scalar_lea.hbm %s1722_s4, 8  ;;  %p1725_p9 = pneg %p1986_p7 }
  0x2c   : > { %p1724_p8 = scmp.ne.s32.totalorder %s1722_s4, %s1723_s6  ;;  %s1728_s24 = scalar_lea.hbm %s2167_s0, 16 }
  0x2d   : > { %p1729_p11 = scmp.lt.s32.totalorder %s1722_s4, %s2167_s0  ;;  %p1730_p0 = scmp.lt.s32.totalorder %s1728_s24, %s1723_s6 }
  0x2e   : > { %p1726_p10 = pnand %p1725_p9, %p1724_p8 }
  0x2f   : > { %p1731_p2 = por %p1730_p0, %p1729_p11 }
  0x30   : > { %p1727_p13 = pneg %p1726_p10 }
  0x32   : > { %p1732_p5 = pnand %p1731_p2, %p1727_p13 }
  0x34   : > { %1735 = shalt.err (!%p1732_p5)
}
  0x35   : > { %1514 = dma.hbm_to_vmem [thread:$0]  (!%p1986_p7), %s342_s1, 128, %s344_s14, %s332_s2  }
  0x36   : > { %352 = sbr.rel (%p1914_p3) target bundleno = 1989 (0x7c5), region = 56  ;;  %s2003_s28 = sand.u32 (!%p1914_p3), 1, %s1817_s10  }
  0x37   : > { %s1464_s25 = sshll.u32 (!%p1914_p3), %s2003_s28, 3  ;;  %s355_s13 = scalar_lea.sflag (!%p1914_p3), [#allocation3], %s2003_s28 }
  0x38   : > { %s2009_s4 = scalar_lea.vmem (!%p1914_p3), [#allocation2], %s1464_s25 }
  0x3b   : > { %1796 = dma.done.wait (%p1965_p12), %s355_s13, 128  }
  0x3c   : > { %1798 = vsyncadd (%p1965_p12), %s355_s13, 4294967168 }
  0x3d   : > { %1800 = dma.done.wait (%p48_p1), [#allocation6], 24768  }
  0x3e   : > { %1802 = vsyncadd (%p48_p1), [#allocation6], 4294942528 }
  0x3f   : > { %1804 = dma.done.wait (%p48_p1), [#allocation9], 4096  }
  0x40   : > { %1806 = vsyncadd (%p48_p1), [#allocation9], 4294963200  ;;  %v2024_v0 = vld [vmem:[%s2009_s4] sm:$0xff]  ;;  %v643_v1 = vld [vmem:[#allocation5 + $0x5a0] sm:$0xff]  ;;  %v415_v33 = vlaneseq  ;;  %vm944_vm7 = vcmask 64512   ;;  %s1475_s13 = sshll.u32 %s1909_s16, 3 }
  0x41   : > { %420 = vadd.xlane.f32.xlu0 %v2024_v0  ;;  %v644_v2 = vld [vmem:[#allocation5 + $0x5a8] sm:$0xff]  ;;  %v645_v3 = vld [vmem:[#allocation5 + $0x5b0] sm:$0xff]  ;;  %683 = vmatpush.msra.mxu0 %v643_v1  ;;  %v646_v4 = vld [vmem:[#allocation5 + $0x5b8] sm:$0xff]  ;;  %s1341_s17 = scalar_lea.hbm %s2176_s9, %s1475_s13  ;;  %s413_s23 = scalar_lea.vmem [#allocation11], %s1464_s25 }
  0x42   : > { %703 = vmatpush.msra.mxu1 %v644_v2  ;;  %v631_v5 = vld [vmem:[#allocation5 + $0x540] sm:$0xff]  ;;  %v632_v6 = vld [vmem:[#allocation5 + $0x548] sm:$0xff]  ;;  %723 = vmatpush.msra.mxu2 %v645_v3  ;;  %v633_v7 = vld [vmem:[#allocation5 + $0x550] sm:$0xff]  ;;  %v2027_v34 = vand.u32 127, %v415_v33  ;;  %s1343_s14 = sshll.u32 %s413_s23, 4  ;;  %s1345_s26 = sshll.u32 %s1341_s17, 4  ;;  %s1344_s14 = int_to_ptr.vmem [resolvable:$true] %s1343_s14  ;;  %s1346_s26 = int_to_ptr.hbm [resolvable:$true] %s1345_s26 }
  0x43   : > { %743 = vmatpush.msra.mxu3 %v646_v4  ;;  %v634_v8 = vld [vmem:[#allocation5 + $0x558] sm:$0xff]  ;;  %v619_v9 = vld [vmem:[#allocation5 + $0x4e0] sm:$0xff]  ;;  %684 = vmatpush.msra.mxu0 %v631_v5  ;;  %v620_v10 = vld [vmem:[#allocation5 + $0x4e8] sm:$0xff]  ;;  %s1331_s16 = scalar_lea.sflag [#allocation4], %s2003_s28  ;;  %s1765_s19 = sshra.s32 %s1346_s26, 4  ;;  %s1766_s19 = int_to_ptr.hbm [resolvable:$true] %s1765_s19 }
  0x44   : > { %704 = vmatpush.msra.mxu1 %v632_v6  ;;  %v621_v11 = vld [vmem:[#allocation5 + $0x4f0] sm:$0xff]  ;;  %v622_v12 = vld [vmem:[#allocation5 + $0x4f8] sm:$0xff]  ;;  %724 = vmatpush.msra.mxu2 %v633_v7  ;;  %v607_v13 = vld [vmem:[#allocation5 + $0x480] sm:$0xff]  ;;  %vm417_vm0 = vcmp.lt.s32.totalorder %v2027_v34, 32  ;;  %s1767_s21 = scalar_lea.hbm %s1766_s19, 8  ;;  %s1771_s25 = scalar_lea.hbm %s2176_s9, 16 }
  0x45   : > { %744 = vmatpush.msra.mxu3 %v634_v8  ;;  %v608_v14 = vld [vmem:[#allocation5 + $0x488] sm:$0xff]  ;;  %685 = vmatpush.msra.mxu0 %v619_v9  ;;  %v609_v15 = vld [vmem:[#allocation5 + $0x490] sm:$0xff]  ;;  %v610_v16 = vld [vmem:[#allocation5 + $0x498] sm:$0xff]  ;;  %p1768_p1 = scmp.ne.s32.totalorder %s1766_s19, %s1767_s21  ;;  %p1772_p12 = scmp.lt.s32.totalorder %s1766_s19, %s2176_s9 }
  0x46   : > { %705 = vmatpush.msra.mxu1 %v620_v10  ;;  %725 = vmatpush.msra.mxu2 %v621_v11  ;;  %v595_v17 = vld [vmem:[#allocation5 + $0x420] sm:$0xff]  ;;  %v596_v18 = vld [vmem:[#allocation5 + $0x428] sm:$0xff]  ;;  %v597_v19 = vld [vmem:[#allocation5 + $0x430] sm:$0xff]  ;;  %p1773_p7 = scmp.lt.s32.totalorder %s1771_s25, %s1767_s21 }
  0x47   : > { %745 = vmatpush.msra.mxu3 %v622_v12  ;;  %686 = vmatpush.msra.mxu0 %v607_v13  ;;  %v598_v20 = vld [vmem:[#allocation5 + $0x438] sm:$0xff]  ;;  %v583_v21 = vld [vmem:[#allocation5 + $0x3c0] sm:$0xff]  ;;  %v584_v22 = vld [vmem:[#allocation5 + $0x3c8] sm:$0xff]  ;;  %p1769_p3 = pnand %p1768_p1, %p1972_p4 }
  0x48   : > { %706 = vmatpush.msra.mxu1 %v608_v14  ;;  %726 = vmatpush.msra.mxu2 %v609_v15  ;;  %v585_v23 = vld [vmem:[#allocation5 + $0x3d0] sm:$0xff]  ;;  %v586_v24 = vld [vmem:[#allocation5 + $0x3d8] sm:$0xff]  ;;  %v571_v25 = vld [vmem:[#allocation5 + $0x360] sm:$0xff]  ;;  %p1774_p8 = por %p1773_p7, %p1772_p12 }
  0x49   : > { %746 = vmatpush.msra.mxu3 %v610_v16  ;;  %687 = vmatpush.msra.mxu0 %v595_v17  ;;  %v572_v26 = vld [vmem:[#allocation5 + $0x368] sm:$0xff]  ;;  %v573_v27 = vld [vmem:[#allocation5 + $0x370] sm:$0xff]  ;;  %v574_v28 = vld [vmem:[#allocation5 + $0x378] sm:$0xff]  ;;  %p1770_p5 = pneg %p1769_p3 }
  0x4a   : > { %707 = vmatpush.msra.mxu1 %v596_v18  ;;  %727 = vmatpush.msra.mxu2 %v597_v19  ;;  %v559_v29 = vld [vmem:[#allocation5 + $0x300] sm:$0xff]  ;;  %v560_v30 = vld [vmem:[#allocation5 + $0x308] sm:$0xff]  ;;  %v561_v31 = vld [vmem:[#allocation5 + $0x310] sm:$0xff] }
  0x4b   : > { %747 = vmatpush.msra.mxu3 %v598_v20  ;;  %688 = vmatpush.msra.mxu0 %v583_v21  ;;  %v562_v32 = vld [vmem:[#allocation5 + $0x318] sm:$0xff]  ;;  %v547_v40 = vld [vmem:[#allocation5 + $0x2a0] sm:$0xff]  ;;  %v548_v41 = vld [vmem:[#allocation5 + $0x2a8] sm:$0xff]  ;;  %p1775_p9 = pnand %p1774_p8, %p1770_p5 }
  0x4c   : > { %708 = vmatpush.msra.mxu1 %v584_v22  ;;  %728 = vmatpush.msra.mxu2 %v585_v23  ;;  %v549_v42 = vld [vmem:[#allocation5 + $0x2b0] sm:$0xff]  ;;  %v550_v43 = vld [vmem:[#allocation5 + $0x2b8] sm:$0xff]  ;;  %v535_v44 = vld [vmem:[#allocation5 + $0x240] sm:$0xff] }
  0x4d   : > { %748 = vmatpush.msra.mxu3 %v586_v24  ;;  %689 = vmatpush.msra.mxu0 %v571_v25  ;;  %v536_v45 = vld [vmem:[#allocation5 + $0x248] sm:$0xff]  ;;  %v537_v46 = vld [vmem:[#allocation5 + $0x250] sm:$0xff]  ;;  %v538_v47 = vld [vmem:[#allocation5 + $0x258] sm:$0xff] }
  0x4e   : > { %709 = vmatpush.msra.mxu1 %v572_v26  ;;  %729 = vmatpush.msra.mxu2 %v573_v27  ;;  %v523_v48 = vld [vmem:[#allocation5 + $0x1e0] sm:$0xff]  ;;  %v524_v49 = vld [vmem:[#allocation5 + $0x1e8] sm:$0xff]  ;;  %v525_v50 = vld [vmem:[#allocation5 + $0x1f0] sm:$0xff] }
  0x4f   : > { %749 = vmatpush.msra.mxu3 %v574_v28  ;;  %690 = vmatpush.msra.mxu0 %v559_v29  ;;  %v526_v51 = vld [vmem:[#allocation5 + $0x1f8] sm:$0xff]  ;;  %v511_v52 = vld [vmem:[#allocation5 + $0x180] sm:$0xff]  ;;  %v512_v53 = vld [vmem:[#allocation5 + $0x188] sm:$0xff] }
  0x50   : > { %710 = vmatpush.msra.mxu1 %v560_v30  ;;  %730 = vmatpush.msra.mxu2 %v561_v31  ;;  %v513_v54 = vld [vmem:[#allocation5 + $0x190] sm:$0xff]  ;;  %v514_v55 = vld [vmem:[#allocation5 + $0x198] sm:$0xff]  ;;  %v499_v56 = vld [vmem:[#allocation5 + $0x120] sm:$0xff] }
  0x51   : > { %750 = vmatpush.msra.mxu3 %v562_v32  ;;  %691 = vmatpush.msra.mxu0 %v547_v40  ;;  %v500_v57 = vld [vmem:[#allocation5 + $0x128] sm:$0xff]  ;;  %v501_v58 = vld [vmem:[#allocation5 + $0x130] sm:$0xff]  ;;  %v502_v59 = vld [vmem:[#allocation5 + $0x138] sm:$0xff] }
  0x52   : > { %711 = vmatpush.msra.mxu1 %v548_v41  ;;  %731 = vmatpush.msra.mxu2 %v549_v42  ;;  %v487_v60 = vld [vmem:[#allocation5 + $0xc0] sm:$0xff]  ;;  %v488_v61 = vld [vmem:[#allocation5 + $0xc8] sm:$0xff]  ;;  %v489_v62 = vld [vmem:[#allocation5 + $0xd0] sm:$0xff] }
  0x53   : > { %751 = vmatpush.msra.mxu3 %v550_v43  ;;  %692 = vmatpush.msra.mxu0 %v535_v44  ;;  %v490_v63 = vld [vmem:[#allocation5 + $0xd8] sm:$0xff]  ;;  %v476_v1 = vld [vmem:[#allocation5 + $0x68] sm:$0xff]  ;;  %v477_v2 = vld [vmem:[#allocation5 + $0x70] sm:$0xff] }
  0x54   : > { %712 = vmatpush.msra.mxu1 %v536_v45  ;;  %732 = vmatpush.msra.mxu2 %v537_v46  ;;  %v478_v3 = vld [vmem:[#allocation5 + $0x78] sm:$0xff]  ;;  %v463_v4 = vld [vmem:[#allocation5] sm:$0xff]  ;;  %v464_v5 = vld [vmem:[#allocation5 + $0x8] sm:$0xff] }
  0x55   : > { %752 = vmatpush.msra.mxu3 %v538_v47  ;;  %693 = vmatpush.msra.mxu0 %v523_v48  ;;  %v465_v6 = vld [vmem:[#allocation5 + $0x10] sm:$0xff]  ;;  %v466_v7 = vld [vmem:[#allocation5 + $0x18] sm:$0xff]  ;;  %v647_v8 = vld [vmem:[#allocation5 + $0x5c0] sm:$0xff] }
  0x56   : > { %713 = vmatpush.msra.mxu1 %v524_v49  ;;  %733 = vmatpush.msra.mxu2 %v525_v50  ;;  %v648_v9 = vld [vmem:[#allocation5 + $0x5c8] sm:$0xff]  ;;  %v649_v10 = vld [vmem:[#allocation5 + $0x5d0] sm:$0xff]  ;;  %v650_v11 = vld [vmem:[#allocation5 + $0x5d8] sm:$0xff] }
  0x57   : > { %753 = vmatpush.msra.mxu3 %v526_v51  ;;  %694 = vmatpush.msra.mxu0 %v511_v52  ;;  %v635_v12 = vld [vmem:[#allocation5 + $0x560] sm:$0xff]  ;;  %v636_v13 = vld [vmem:[#allocation5 + $0x568] sm:$0xff]  ;;  %v637_v14 = vld [vmem:[#allocation5 + $0x570] sm:$0xff] }
  0x58   : > { %714 = vmatpush.msra.mxu1 %v512_v53  ;;  %734 = vmatpush.msra.mxu2 %v513_v54  ;;  %v638_v15 = vld [vmem:[#allocation5 + $0x578] sm:$0xff]  ;;  %v623_v16 = vld [vmem:[#allocation5 + $0x500] sm:$0xff]  ;;  %v624_v17 = vld [vmem:[#allocation5 + $0x508] sm:$0xff] }
  0x59   : > { %754 = vmatpush.msra.mxu3 %v514_v55  ;;  %695 = vmatpush.msra.mxu0 %v499_v56  ;;  %v625_v18 = vld [vmem:[#allocation5 + $0x510] sm:$0xff]  ;;  %v626_v19 = vld [vmem:[#allocation5 + $0x518] sm:$0xff]  ;;  %v611_v20 = vld [vmem:[#allocation5 + $0x4a0] sm:$0xff] }
  0x5a   : > { %715 = vmatpush.msra.mxu1 %v500_v57  ;;  %735 = vmatpush.msra.mxu2 %v501_v58  ;;  %v612_v21 = vld [vmem:[#allocation5 + $0x4a8] sm:$0xff]  ;;  %v613_v22 = vld [vmem:[#allocation5 + $0x4b0] sm:$0xff]  ;;  %v614_v23 = vld [vmem:[#allocation5 + $0x4b8] sm:$0xff] }
  0x5b   : > { %755 = vmatpush.msra.mxu3 %v502_v59  ;;  %696 = vmatpush.msra.mxu0 %v487_v60  ;;  %v599_v24 = vld [vmem:[#allocation5 + $0x440] sm:$0xff]  ;;  %v600_v25 = vld [vmem:[#allocation5 + $0x448] sm:$0xff]  ;;  %v601_v26 = vld [vmem:[#allocation5 + $0x450] sm:$0xff] }
  0x5c   : > { %716 = vmatpush.msra.mxu1 %v488_v61  ;;  %736 = vmatpush.msra.mxu2 %v489_v62  ;;  %v602_v27 = vld [vmem:[#allocation5 + $0x458] sm:$0xff]  ;;  %v587_v28 = vld [vmem:[#allocation5 + $0x3e0] sm:$0xff]  ;;  %v588_v29 = vld [vmem:[#allocation5 + $0x3e8] sm:$0xff] }
  0x5d   : > { %756 = vmatpush.msra.mxu3 %v490_v63  ;;  %v589_v30 = vld [vmem:[#allocation5 + $0x3f0] sm:$0xff]  ;;  %v590_v31 = vld [vmem:[#allocation5 + $0x3f8] sm:$0xff]  ;;  %v575_v32 = vld [vmem:[#allocation5 + $0x380] sm:$0xff] }
  0x5e   : > { %717 = vmatpush.msra.mxu1 %v476_v1  ;;  %737 = vmatpush.msra.mxu2 %v477_v2  ;;  %v576_v33 = vld [vmem:[#allocation5 + $0x388] sm:$0xff]  ;;  %v565_v40 = vld [vmem:[#allocation5 + $0x330] sm:$0xff]  ;;  %v566_v41 = vld [vmem:[#allocation5 + $0x338] sm:$0xff] }
  0x5f   : > { %757 = vmatpush.msra.mxu3 %v478_v3  ;;  %v551_v42 = vld [vmem:[#allocation5 + $0x2c0] sm:$0xff]  ;;  %v552_v43 = vld [vmem:[#allocation5 + $0x2c8] sm:$0xff]  ;;  %v553_v44 = vld [vmem:[#allocation5 + $0x2d0] sm:$0xff] }
  0x60   : > { %718 = vmatpush.msra.mxu1 %v464_v5  ;;  %738 = vmatpush.msra.mxu2 %v465_v6  ;;  %v554_v46 = vld [vmem:[#allocation5 + $0x2d8] sm:$0xff]  ;;  %v539_v48 = vld [vmem:[#allocation5 + $0x260] sm:$0xff]  ;;  %v540_v49 = vld [vmem:[#allocation5 + $0x268] sm:$0xff] }
  0x61   : > { %758 = vmatpush.msra.mxu3 %v466_v7  ;;  %v541_v50 = vld [vmem:[#allocation5 + $0x270] sm:$0xff]  ;;  %v542_v51 = vld [vmem:[#allocation5 + $0x278] sm:$0xff]  ;;  %v527_v52 = vld [vmem:[#allocation5 + $0x200] sm:$0xff] }
  0x62   : > { %783 = vmatpush.msrb.mxu1 %v648_v9  ;;  %803 = vmatpush.msrb.mxu2 %v649_v10  ;;  %v528_v53 = vld [vmem:[#allocation5 + $0x208] sm:$0xff]  ;;  %v529_v54 = vld [vmem:[#allocation5 + $0x210] sm:$0xff]  ;;  %v530_v55 = vld [vmem:[#allocation5 + $0x218] sm:$0xff] }
  0x63   : > { %823 = vmatpush.msrb.mxu3 %v650_v11  ;;  %v515_v56 = vld [vmem:[#allocation5 + $0x1a0] sm:$0xff]  ;;  %v516_v57 = vld [vmem:[#allocation5 + $0x1a8] sm:$0xff]  ;;  %v517_v58 = vld [vmem:[#allocation5 + $0x1b0] sm:$0xff] }
  0x64   : > { %784 = vmatpush.msrb.mxu1 %v636_v13  ;;  %804 = vmatpush.msrb.mxu2 %v637_v14  ;;  %v518_v59 = vld [vmem:[#allocation5 + $0x1b8] sm:$0xff]  ;;  %v503_v60 = vld [vmem:[#allocation5 + $0x140] sm:$0xff]  ;;  %v504_v61 = vld [vmem:[#allocation5 + $0x148] sm:$0xff] }
  0x65   : > { %824 = vmatpush.msrb.mxu3 %v638_v15  ;;  %v505_v62 = vld [vmem:[#allocation5 + $0x150] sm:$0xff]  ;;  %v506_v63 = vld [vmem:[#allocation5 + $0x158] sm:$0xff]  ;;  %v491_v1 = vld [vmem:[#allocation5 + $0xe0] sm:$0xff] }
  0x66   : > { %785 = vmatpush.msrb.mxu1 %v624_v17  ;;  %805 = vmatpush.msrb.mxu2 %v625_v18  ;;  %v492_v2 = vld [vmem:[#allocation5 + $0xe8] sm:$0xff]  ;;  %v493_v3 = vld [vmem:[#allocation5 + $0xf0] sm:$0xff]  ;;  %v494_v5 = vld [vmem:[#allocation5 + $0xf8] sm:$0xff] }
  0x67   : > { %825 = vmatpush.msrb.mxu3 %v626_v19  ;;  %v479_v6 = vld [vmem:[#allocation5 + $0x80] sm:$0xff]  ;;  %v480_v7 = vld [vmem:[#allocation5 + $0x88] sm:$0xff]  ;;  %v482_v10 = vld [vmem:[#allocation5 + $0x98] sm:$0xff] }
  0x68   : > { %786 = vmatpush.msrb.mxu1 %v612_v21  ;;  %806 = vmatpush.msrb.mxu2 %v613_v22  ;;  %v467_v11 = vld [vmem:[#allocation5 + $0x20] sm:$0xff]  ;;  %v469_v13 = vld [vmem:[#allocation5 + $0x30] sm:$0xff]  ;;  %v470_v15 = vld [vmem:[#allocation5 + $0x38] sm:$0xff] }
  0x69   : > { %826 = vmatpush.msrb.mxu3 %v614_v23  ;;  %v1255_v34 = vld [vmem:[#allocation8 + $0x40] sm:$0xff] }
  0x6a   : > { %787 = vmatpush.msrb.mxu1 %v600_v25  ;;  %807 = vmatpush.msrb.mxu2 %v601_v26 }
  0x6b   : > { %827 = vmatpush.msrb.mxu3 %v602_v27  ;;  %v1569_v27 = vld [vmem:[%s2175_s8] ss:$0 sm:$0xff] }
  0x6c   : > { %788 = vmatpush.msrb.mxu1 %v588_v29  ;;  %808 = vmatpush.msrb.mxu2 %v589_v30 }
  0x6d   : > { %828 = vmatpush.msrb.mxu3 %v590_v31 }
  0x6e   : > { %789 = vmatpush.msrb.mxu1 %v576_v33  ;;  %v1570_v33 = vld [vmem:[%s2175_s8 + $0x1] ss:$0 sm:$0xff] }
  0xb4   : > { %v421_v35 = vpop.xlane.xlu0 %420 }
  0xb5   : > { %v422_v36 = vmul.f32 0.03125, %v421_v35  ;;  %v577_v35 = vld [vmem:[#allocation5 + $0x390] sm:$0xff] }
  0xb6   : > { %809 = vmatpush.msrb.mxu2 %v577_v35 }
  0xb7   : > { %v423_v37 = vsub.f32 %v2024_v0, %v422_v36  ;;  %v475_v0 = vld [vmem:[#allocation5 + $0x60] sm:$0xff]  ;;  %v578_v36 = vld [vmem:[#allocation5 + $0x398] sm:$0xff] }
  0xb8   : > { %697 = vmatpush.msra.mxu0 %v475_v0  ;;  %829 = vmatpush.msrb.mxu3 %v578_v36 }
  0xb9   : > { %v2033_v38 = vsel %vm417_vm0, %v423_v37, 0.0  ;;  %v563_v37 = vld [vmem:[#allocation5 + $0x320] sm:$0xff]  ;;  %810 = vmatpush.msrb.mxu2 %v565_v40 }
  0xba   : > { %v427_v39 = vmul.f32 %v2033_v38, %v2033_v38  ;;  %698 = vmatpush.msra.mxu0 %v463_v4  ;;  %830 = vmatpush.msrb.mxu3 %v566_v41  ;;  %v651_v40 = vld [vmem:[#allocation5 + $0x5e0] sm:$0xff]  ;;  %v652_v41 = vld [vmem:[#allocation5 + $0x5e8] sm:$0xff] }
  0xbb   : > { %811 = vmatpush.msrb.mxu2 %v553_v44  ;;  %v640_v44 = vld [vmem:[#allocation5 + $0x588] sm:$0xff] }
  0xbc   : > { %428 = vadd.xlane.f32.xlu0 %v427_v39  ;;  %763 = vmatpush.msrb.mxu0 %v647_v8  ;;  %v564_v39 = vld [vmem:[#allocation5 + $0x328] sm:$0xff]  ;;  %v481_v8 = vld [vmem:[#allocation5 + $0x90] sm:$0xff] }
  0xbd   : > { %790 = vmatpush.msrb.mxu1 %v564_v39  ;;  %831 = vmatpush.msrb.mxu3 %v554_v46  ;;  %v642_v46 = vld [vmem:[#allocation5 + $0x598] sm:$0xff] }
  0xbe   : > { %764 = vmatpush.msrb.mxu0 %v635_v12  ;;  %812 = vmatpush.msrb.mxu2 %v541_v50  ;;  %v468_v12 = vld [vmem:[#allocation5 + $0x28] sm:$0xff]  ;;  %v630_v50 = vld [vmem:[#allocation5 + $0x538] sm:$0xff] }
  0xbf   : > { %791 = vmatpush.msrb.mxu1 %v552_v43  ;;  %832 = vmatpush.msrb.mxu3 %v542_v51  ;;  %v654_v43 = vld [vmem:[#allocation5 + $0x5f8] sm:$0xff]  ;;  %v615_v51 = vld [vmem:[#allocation5 + $0x4c0] sm:$0xff] }
  0xc0   : > { %765 = vmatpush.msrb.mxu0 %v623_v16  ;;  %813 = vmatpush.msrb.mxu2 %v529_v54  ;;  %v618_v54 = vld [vmem:[#allocation5 + $0x4d8] sm:$0xff] }
  0xc1   : > { %792 = vmatpush.msrb.mxu1 %v540_v49  ;;  %833 = vmatpush.msrb.mxu3 %v530_v55  ;;  %v629_v49 = vld [vmem:[#allocation5 + $0x530] sm:$0xff]  ;;  %v603_v55 = vld [vmem:[#allocation5 + $0x460] sm:$0xff] }
  0xc2   : > { %766 = vmatpush.msrb.mxu0 %v611_v20  ;;  %814 = vmatpush.msrb.mxu2 %v517_v58  ;;  %v606_v58 = vld [vmem:[#allocation5 + $0x478] sm:$0xff] }
  0xc3   : > { %793 = vmatpush.msrb.mxu1 %v528_v53  ;;  %834 = vmatpush.msrb.mxu3 %v518_v59  ;;  %v617_v53 = vld [vmem:[#allocation5 + $0x4d0] sm:$0xff]  ;;  %v591_v59 = vld [vmem:[#allocation5 + $0x400] sm:$0xff] }
  0xc4   : > { %767 = vmatpush.msrb.mxu0 %v599_v24  ;;  %815 = vmatpush.msrb.mxu2 %v505_v62  ;;  %v594_v62 = vld [vmem:[#allocation5 + $0x418] sm:$0xff] }
  0xc5   : > { %794 = vmatpush.msrb.mxu1 %v516_v57  ;;  %835 = vmatpush.msrb.mxu3 %v506_v63  ;;  %v605_v57 = vld [vmem:[#allocation5 + $0x470] sm:$0xff]  ;;  %v579_v63 = vld [vmem:[#allocation5 + $0x3a0] sm:$0xff] }
  0xc6   : > { %768 = vmatpush.msrb.mxu0 %v587_v28  ;;  %816 = vmatpush.msrb.mxu2 %v493_v3  ;;  %v567_v3 = vld [vmem:[#allocation5 + $0x340] sm:$0xff] }
  0xc7   : > { %795 = vmatpush.msrb.mxu1 %v504_v61  ;;  %836 = vmatpush.msrb.mxu3 %v494_v5  ;;  %v593_v61 = vld [vmem:[#allocation5 + $0x410] sm:$0xff] }
  0xc8   : > { %769 = vmatpush.msrb.mxu0 %v575_v32  ;;  %817 = vmatpush.msrb.mxu2 %v481_v8  ;;  %v459_v32 = vmul.f32 %v1569_v27, %v2033_v38  ;;  %v639_v38 = vld [vmem:[#allocation5 + $0x580] sm:$0xff]  ;;  %v569_v5 = vld [vmem:[#allocation5 + $0x350] sm:$0xff]  ;;  %v556_v8 = vld [vmem:[#allocation5 + $0x2e8] sm:$0xff] }
  0xc9   : > { %796 = vmatpush.msrb.mxu1 %v492_v2  ;;  %837 = vmatpush.msrb.mxu3 %v482_v10  ;;  %v582_v2 = vld [vmem:[#allocation5 + $0x3b8] sm:$0xff]  ;;  %v495_v27 = vld [vmem:[#allocation5 + $0x100] sm:$0xff] }
  0xca   : > { %770 = vmatpush.msrb.mxu0 %v563_v37  ;;  %818 = vmatpush.msrb.mxu2 %v469_v13  ;;  %v558_v10 = vld [vmem:[#allocation5 + $0x2f8] sm:$0xff]  ;;  %v545_v13 = vld [vmem:[#allocation5 + $0x290] sm:$0xff] }
  0xcb   : > { %797 = vmatpush.msrb.mxu1 %v480_v7  ;;  %838 = vmatpush.msrb.mxu3 %v470_v15  ;;  %v555_v7 = vld [vmem:[#allocation5 + $0x2e0] sm:$0xff] }
  0xcc   : > { %771 = vmatpush.msrb.mxu0 %v551_v42  ;;  %v653_v42 = vld [vmem:[#allocation5 + $0x5f0] sm:$0xff]  ;;  %v531_v15 = vld [vmem:[#allocation5 + $0x220] sm:$0xff] }
  0xcd   : > { %798 = vmatpush.msrb.mxu1 %v468_v12  ;;  %v544_v12 = vld [vmem:[#allocation5 + $0x288] sm:$0xff] }
  0xce   : > { %772 = vmatpush.msrb.mxu0 %v539_v48  ;;  %v628_v48 = vld [vmem:[#allocation5 + $0x528] sm:$0xff] }
  0xd0   : > { %773 = vmatpush.msrb.mxu0 %v527_v52  ;;  %v616_v52 = vld [vmem:[#allocation5 + $0x4c8] sm:$0xff] }
  0xd2   : > { %774 = vmatpush.msrb.mxu0 %v515_v56  ;;  %v604_v56 = vld [vmem:[#allocation5 + $0x468] sm:$0xff] }
  0xd4   : > { %775 = vmatpush.msrb.mxu0 %v503_v60  ;;  %v592_v60 = vld [vmem:[#allocation5 + $0x408] sm:$0xff] }
  0xd6   : > { %776 = vmatpush.msrb.mxu0 %v491_v1  ;;  %v581_v1 = vld [vmem:[#allocation5 + $0x3b0] sm:$0xff] }
  0xd8   : > { %777 = vmatpush.msrb.mxu0 %v479_v6  ;;  %v570_v6 = vld [vmem:[#allocation5 + $0x358] sm:$0xff] }
  0xda   : > { %778 = vmatpush.msrb.mxu0 %v467_v11  ;;  %v543_v11 = vld [vmem:[#allocation5 + $0x280] sm:$0xff] }
 0x12f   : > { %v429_v45 = vpop.xlane.xlu0 %428 }
 0x130   : > { %v2037_v47 = vmul.f32 0.032258064, %v429_v45  ;;  %v641_v45 = vld [vmem:[#allocation5 + $0x590] sm:$0xff] }
 0x132   : > { %1576 = vrsqrt.f32 %v2037_v47  ;;  %vm438_vm1 = vcmp.eq.f32.partialorder %v2037_v47, inf  ;;  %v441_v19 = vand.u32 2147483648, %v2037_v47  ;;  %vm440_vm2 = vcmp.eq.f32.partialorder %v2037_v47, 0.0 }
 0x138   : > { %v1577_v0 = vpop.eup %1576 }
 0x139   : > { %v432_v4 = vmul.f32 %v1577_v0, %v2037_v47 }
 0x13b   : > { %v433_v9 = vmul.f32 %v1577_v0, %v432_v4  ;;  %v568_v4 = vld [vmem:[#allocation5 + $0x348] sm:$0xff] }
 0x13d   : > { %v434_v14 = vmul.f32 0.5, %v433_v9  ;;  %v557_v9 = vld [vmem:[#allocation5 + $0x2f0] sm:$0xff] }
 0x13f   : > { %v435_v16 = vsub.f32 1.5, %v434_v14  ;;  %v546_v14 = vld [vmem:[#allocation5 + $0x298] sm:$0xff] }
 0x141   : > { %v436_v17 = vmul.f32 %v1577_v0, %v435_v16  ;;  %v580_v0 = vld [vmem:[#allocation5 + $0x3a8] sm:$0xff] }
 0x142   : > { %v532_v16 = vld [vmem:[#allocation5 + $0x228] sm:$0xff] }
 0x143   : > { %v437_v18 = vmul.f32 %v436_v17, %v2037_v47  ;;  %v533_v17 = vld [vmem:[#allocation5 + $0x230] sm:$0xff] }
 0x145   : > { %v439_v20 = vsel %vm438_vm1, %v2037_v47, %v437_v18  ;;  %v627_v47 = vld [vmem:[#allocation5 + $0x520] sm:$0xff]  ;;  %v534_v18 = vld [vmem:[#allocation5 + $0x238] sm:$0xff] }
 0x146   : > { %v442_v21 = vsel %vm440_vm2, %v441_v19, %v439_v20  ;;  %v519_v19 = vld [vmem:[#allocation5 + $0x1c0] sm:$0xff]  ;;  %v520_v20 = vld [vmem:[#allocation5 + $0x1c8] sm:$0xff] }
 0x147   : > { %v443_v22 = vadd.f32 1e-06, %v442_v21  ;;  %v521_v21 = vld [vmem:[#allocation5 + $0x1d0] sm:$0xff] }
 0x149   : > { %1578 = vrcp.f32 %v443_v22  ;;  %v455_v26 = vand.u32 2147483648, %v443_v22  ;;  %v453_v29 = vand.u32 2147483647, %v443_v22  ;;  %vm449_vm4 = vweird.f32 %v443_v22 }
 0x14b   : > { %v456_v31 = vor.u32 1.1754944e-38, %v455_v26  ;;  %vm454_vm6 = vcmp.eq.f32.partialorder %v453_v29, 8.507059e+37  ;;  %v510_v26 = vld [vmem:[#allocation5 + $0x178] sm:$0xff]  ;;  %v497_v29 = vld [vmem:[#allocation5 + $0x110] sm:$0xff] }
 0x14f   : > { %v1579_v23 = vpop.eup %1578 }
 0x150   : > { %v445_v24 = vmul.f32 %v1579_v23, %v443_v22  ;;  %vm450_vm3 = vweird.f32 %v1579_v23  ;;  %v522_v22 = vld [vmem:[#allocation5 + $0x1d8] sm:$0xff] }
 0x151   : > { %vm451_vm5 = vmor %vm449_vm4, %vm450_vm3 }
 0x152   : > { %v446_v25 = vsub.f32 1.0, %v445_v24  ;;  %v508_v24 = vld [vmem:[#allocation5 + $0x168] sm:$0xff] }
 0x154   : > { %v447_v28 = vmul.f32 %v1579_v23, %v446_v25  ;;  %v509_v25 = vld [vmem:[#allocation5 + $0x170] sm:$0xff] }
 0x156   : > { %v448_v30 = vadd.f32 %v1579_v23, %v447_v28  ;;  %v496_v28 = vld [vmem:[#allocation5 + $0x108] sm:$0xff] }
 0x158   : > { %v452_v35 = vsel %vm451_vm5, %v1579_v23, %v448_v30  ;;  %v507_v23 = vld [vmem:[#allocation5 + $0x160] sm:$0xff]  ;;  %v498_v30 = vld [vmem:[#allocation5 + $0x118] sm:$0xff] }
 0x159   : > { %v457_v36 = vsel %vm454_vm6, %v456_v31, %v452_v35  ;;  %v483_v31 = vld [vmem:[#allocation5 + $0xa0] sm:$0xff]  ;;  %v486_v35 = vld [vmem:[#allocation5 + $0xb8] sm:$0xff] }
 0x15a   : > { %v460_v37 = vmul.f32 %v459_v32, %v457_v36  ;;  %v484_v32 = vld [vmem:[#allocation5 + $0xa8] sm:$0xff]  ;;  %v471_v36 = vld [vmem:[#allocation5 + $0x40] sm:$0xff] }
 0x15c   : > { %v2053_v39 = vadd.f32 %v1570_v33, %v460_v37  ;;  %v485_v33 = vld [vmem:[#allocation5 + $0xb0] sm:$0xff]  ;;  %v472_v37 = vld [vmem:[#allocation5 + $0x48] sm:$0xff] }
 0x15e   : > { %699 = vmatmul.f32.vlgmr.msra.gmra.mxu0 %v2053_v39  ;;  %719 = vmatmul.f32.vlgmr.msra.gmra.mxu1 %v2053_v39 }
 0x15f   : > { %739 = vmatmul.f32.vlgmr.msra.gmra.mxu2 %v2053_v39  ;;  %759 = vmatmul.f32.vlgmr.msra.gmra.mxu3 %v2053_v39 }
 0x160   : > { %843 = vmatpush.msra.mxu0 %v651_v40  ;;  %863 = vmatpush.msra.mxu1 %v652_v41  ;;  %v473_v40 = vld [vmem:[#allocation5 + $0x50] sm:$0xff]  ;;  %v474_v41 = vld [vmem:[#allocation5 + $0x58] sm:$0xff] }
 0x161   : > { %883 = vmatpush.msra.mxu2 %v653_v42  ;;  %903 = vmatpush.msra.mxu3 %v654_v43 }
 0x162   : > { %844 = vmatpush.msra.mxu0 %v639_v38  ;;  %864 = vmatpush.msra.mxu1 %v640_v44  ;;  %v2067_v38 = vld [vmem:[#allocation7] sm:$0xff] }
 0x163   : > { %884 = vmatpush.msra.mxu2 %v641_v45  ;;  %904 = vmatpush.msra.mxu3 %v642_v46  ;;  %v663_v44 = vperm.slane %v2067_v38, 4  ;;  %v664_v45 = vperm.slane %v2067_v38, 5  ;;  %v659_v46 = vperm.slane %v2067_v38, 0 }
 0x164   : > { %845 = vmatpush.msra.mxu0 %v627_v47  ;;  %865 = vmatpush.msra.mxu1 %v628_v48  ;;  %v660_v47 = vperm.slane %v2067_v38, 1 }
 0x165   : > { %885 = vmatpush.msra.mxu2 %v629_v49  ;;  %905 = vmatpush.msra.mxu3 %v630_v50 }
 0x166   : > { %846 = vmatpush.msra.mxu0 %v615_v51  ;;  %866 = vmatpush.msra.mxu1 %v616_v52 }
 0x167   : > { %886 = vmatpush.msra.mxu2 %v617_v53  ;;  %906 = vmatpush.msra.mxu3 %v618_v54  ;;  %v2075_v54 = vld [vmem:[#allocation7 + $0x8] sm:$0xf] }
 0x168   : > { %779 = vmatmul.f32.vlgmr.msrb.gmra.mxu0 %v2053_v39  ;;  %799 = vmatmul.f32.vlgmr.msrb.gmra.mxu1 %v2053_v39 }
 0x169   : > { %819 = vmatmul.f32.vlgmr.msrb.gmra.mxu2 %v2053_v39  ;;  %839 = vmatmul.f32.vlgmr.msrb.gmra.mxu3 %v2053_v39 }
 0x16a   : > { %847 = vmatpush.msra.mxu0 %v603_v55  ;;  %867 = vmatpush.msra.mxu1 %v604_v56  ;;  %v667_v55 = vperm.slane %v2075_v54, 0  ;;  %v668_v56 = vperm.slane %v2075_v54, 1 }
 0x16b   : > { %887 = vmatpush.msra.mxu2 %v605_v57  ;;  %907 = vmatpush.msra.mxu3 %v606_v58  ;;  %v665_v57 = vperm.slane %v2067_v38, 6 }
 0x16c   : > { %848 = vmatpush.msra.mxu0 %v591_v59  ;;  %868 = vmatpush.msra.mxu1 %v592_v60 }
 0x16d   : > { %888 = vmatpush.msra.mxu2 %v593_v61  ;;  %908 = vmatpush.msra.mxu3 %v594_v62 }
 0x16e   : > { %849 = vmatpush.msra.mxu0 %v579_v63  ;;  %869 = vmatpush.msra.mxu1 %v580_v0  ;;  %v669_v0 = vperm.slane %v2075_v54, 2 }
 0x16f   : > { %889 = vmatpush.msra.mxu2 %v581_v1  ;;  %909 = vmatpush.msra.mxu3 %v582_v2 }
 0x170   : > { %850 = vmatpush.msra.mxu0 %v567_v3  ;;  %870 = vmatpush.msra.mxu1 %v568_v4 }
 0x171   : > { %890 = vmatpush.msra.mxu2 %v569_v5  ;;  %910 = vmatpush.msra.mxu3 %v570_v6 }
 0x172   : > { %851 = vmatpush.msra.mxu0 %v555_v7  ;;  %871 = vmatpush.msra.mxu1 %v556_v8 }
 0x173   : > { %891 = vmatpush.msra.mxu2 %v557_v9  ;;  %911 = vmatpush.msra.mxu3 %v558_v10 }
 0x174   : > { %852 = vmatpush.msra.mxu0 %v543_v11  ;;  %872 = vmatpush.msra.mxu1 %v544_v12 }
 0x175   : > { %892 = vmatpush.msra.mxu2 %v545_v13  ;;  %912 = vmatpush.msra.mxu3 %v546_v14 }
 0x176   : > { %853 = vmatpush.msra.mxu0 %v531_v15  ;;  %873 = vmatpush.msra.mxu1 %v532_v16 }
 0x177   : > { %893 = vmatpush.msra.mxu2 %v533_v17  ;;  %913 = vmatpush.msra.mxu3 %v534_v18 }
 0x178   : > { %854 = vmatpush.msra.mxu0 %v519_v19  ;;  %874 = vmatpush.msra.mxu1 %v520_v20 }
 0x179   : > { %894 = vmatpush.msra.mxu2 %v521_v21  ;;  %914 = vmatpush.msra.mxu3 %v522_v22 }
 0x17a   : > { %855 = vmatpush.msra.mxu0 %v507_v23  ;;  %875 = vmatpush.msra.mxu1 %v508_v24 }
 0x17b   : > { %895 = vmatpush.msra.mxu2 %v509_v25  ;;  %915 = vmatpush.msra.mxu3 %v510_v26 }
 0x17c   : > { %856 = vmatpush.msra.mxu0 %v495_v27  ;;  %876 = vmatpush.msra.mxu1 %v496_v28 }
 0x17d   : > { %896 = vmatpush.msra.mxu2 %v497_v29  ;;  %916 = vmatpush.msra.mxu3 %v498_v30 }
 0x17e   : > { %857 = vmatpush.msra.mxu0 %v483_v31  ;;  %877 = vmatpush.msra.mxu1 %v484_v32  ;;  %v666_v32 = vperm.slane %v2067_v38, 7 }
 0x17f   : > { %897 = vmatpush.msra.mxu2 %v485_v33  ;;  %917 = vmatpush.msra.mxu3 %v486_v35 }
 0x180   : > { %858 = vmatpush.msra.mxu0 %v471_v36  ;;  %878 = vmatpush.msra.mxu1 %v472_v37 }
 0x181   : > { %898 = vmatpush.msra.mxu2 %v473_v40  ;;  %918 = vmatpush.msra.mxu3 %v474_v41 }
 0x182   : > { %859 = vmatmul.f32.vlgmr.msra.gmra.mxu0 %v2053_v39  ;;  %879 = vmatmul.f32.vlgmr.msra.gmra.mxu1 %v2053_v39 }
 0x183   : > { %899 = vmatmul.f32.vlgmr.msra.gmra.mxu2 %v2053_v39  ;;  %919 = vmatmul.f32.vlgmr.msra.gmra.mxu3 %v2053_v39 }
 0x1db   : > { %v700_v42 = vpop.f32.mrf.mxu0  ;;  %v720_v43 = vpop.f32.mrf.mxu1 }
 0x1dc   : > { %v701_v52 = vadd.f32 %v700_v42, %v659_v46  ;;  %v721_v39 = vadd.f32 %v720_v43, %v660_v47  ;;  %v661_v46 = vperm.slane %v2067_v38, 2 }
 0x1e2   : > { %v2073_v53 = vpop.f32.mrf.mxu2  ;;  %v2081_v3 = vpop.f32.mrf.mxu3 }
 0x1e5   : > { %v780_v48 = vpop.f32.mrf.mxu0  ;;  %v800_v49 = vpop.f32.mrf.mxu1 }
 0x1e6   : > { %v781_v50 = vadd.f32 %v780_v48, %v663_v44  ;;  %v801_v51 = vadd.f32 %v800_v49, %v664_v45  ;;  %v670_v48 = vperm.slane %v2075_v54, 3 }
 0x1e8   : > { %938 = vmatpush.xpose.msrb.mxu2 %v781_v50  ;;  %984 = vmatpush.xpose.msrb.mxu3 %v801_v51 }
 0x1eb   : > { %939 = vmatmul.f32.vlgmr.msrb.gmra.mxu2 %v701_v52  ;;  %985 = vmatmul.f32.vlgmr.msrb.gmra.mxu3 %v721_v39  ;;  %v741_v52 = vadd.f32 %v2073_v53, %v661_v46 }
 0x1ec   : > { %v820_v58 = vpop.f32.mrf.mxu2  ;;  %v840_v4 = vpop.f32.mrf.mxu3 }
 0x1ed   : > { %v821_v63 = vadd.f32 %v820_v58, %v665_v57  ;;  %v841_v42 = vadd.f32 %v840_v4, %v666_v32 }
 0x1ff   : > { %v860_v59 = vpop.f32.mrf.mxu0  ;;  %v880_v60 = vpop.f32.mrf.mxu1 }
 0x200   : > { %v861_v61 = vadd.f32 %v860_v59, %v667_v55  ;;  %v881_v62 = vadd.f32 %v880_v60, %v668_v56  ;;  %v662_v56 = vperm.slane %v2067_v38, 3 }
 0x202   : > { %1032 = vmatpush.msra.mxu2 %v881_v62  ;;  %1055 = vmatpush.msra.mxu3 %v861_v61  ;;  %v761_v57 = vadd.f32 %v2081_v3, %v662_v56  ;;  %v1257_v56 = vld [vmem:[#allocation8 + $0x50] sm:$0xff] }
 0x204   : > { %1075 = vmatpush.xpose.msrb.mxu2 %v821_v63 }
 0x206   : > { %v900_v1 = vpop.f32.mrf.mxu2  ;;  %v2083_v5 = vpop.f32.mrf.mxu3 }
 0x207   : > { %v901_v2 = vadd.f32 %v900_v1, %v669_v0  ;;  %v921_v55 = vadd.f32 %v2083_v5, %v670_v48 }
 0x209   : > { %1123 = vmatpush.msrb.mxu3 %v901_v2 }
 0x26e   : > { %v940_v6 = vpop.f32.mrf.mxu2  ;;  %v986_v7 = vpop.f32.mrf.mxu3 }
 0x26f   : > { %v943_v8 = vmul.f32 0.35355338, %v940_v6  ;;  %v989_v9 = vmul.f32 0.35355338, %v986_v7 }
 0x271   : > { %v990_v10 = vsel %vm944_vm7, %v989_v9, -inf  ;;  %v945_v11 = vsel %vm944_vm7, %v943_v8, -inf }
 0x272   : > { %991 = vmax.xlane.f32.xlu1 %v990_v10  ;;  %946 = vmax.xlane.f32.xlu2 %v945_v11 }
 0x2e5   : > { %v992_v12 = vpop.xlane.xlu1 %991  ;;  %v947_v13 = vpop.xlane.xlu2 %946 }
 0x2e6   : > { %v993_v14 = vsub.f32 %v989_v9, %v992_v12  ;;  %v948_v16 = vsub.f32 %v943_v8, %v947_v13 }
 0x2e8   : > { %v994_v15 = vmul.f32 1.442695, %v993_v14  ;;  %v949_v17 = vmul.f32 1.442695, %v948_v16 }
 0x2ea   : > { %1580 = vpow2.f32 %v994_v15 }
 0x2eb   : > { %1582 = vpow2.f32 %v949_v17 }
 0x2f0   : > { %v1581_v18 = vpop.eup %1580 }
 0x2f1   : > { %v996_v19 = vsel %vm944_vm7, %v1581_v18, 0.0  ;;  %v1583_v20 = vpop.eup %1582 }
 0x2f2   : > { %997 = vadd.xlane.f32.xlu1 %v996_v19  ;;  %v951_v21 = vsel %vm944_vm7, %v1583_v20, 0.0 }
 0x2fa   : > { %952 = vadd.xlane.f32.xlu1 %v951_v21 }
 0x365   : > { %v998_v22 = vpop.xlane.xlu1 %997 }
 0x366   : > { %1584 = vrcp.f32 %v998_v22  ;;  %v1010_v27 = vand.u32 2147483648, %v998_v22  ;;  %v1008_v29 = vand.u32 2147483647, %v998_v22  ;;  %vm1004_vm9 = vweird.f32 %v998_v22 }
 0x368   : > { %v1011_v33 = vor.u32 1.1754944e-38, %v1010_v27  ;;  %vm1009_vm11 = vcmp.eq.f32.partialorder %v1008_v29, 8.507059e+37 }
 0x36c   : > { %v1585_v23 = vpop.eup %1584 }
 0x36d   : > { %v1000_v24 = vmul.f32 %v1585_v23, %v998_v22  ;;  %v953_v25 = vpop.xlane.xlu1 %952  ;;  %vm1005_vm8 = vweird.f32 %v1585_v23 }
 0x36e   : > { %1586 = vrcp.f32 %v953_v25  ;;  %vm1006_vm10 = vmor %vm1004_vm9, %vm1005_vm8  ;;  %v965_v43 = vand.u32 2147483648, %v953_v25  ;;  %v963_v45 = vand.u32 2147483647, %v953_v25  ;;  %vm959_vm13 = vweird.f32 %v953_v25 }
 0x36f   : > { %v1001_v26 = vsub.f32 1.0, %v1000_v24 }
 0x370   : > { %v966_v49 = vor.u32 1.1754944e-38, %v965_v43  ;;  %vm964_vm15 = vcmp.eq.f32.partialorder %v963_v45, 8.507059e+37 }
 0x371   : > { %v1002_v28 = vmul.f32 %v1585_v23, %v1001_v26 }
 0x373   : > { %v1003_v30 = vadd.f32 %v1585_v23, %v1002_v28 }
 0x374   : > { %v1587_v31 = vpop.eup %1586 }
 0x375   : > { %v1007_v35 = vsel %vm1006_vm10, %v1585_v23, %v1003_v30  ;;  %v955_v36 = vmul.f32 %v1587_v31, %v953_v25  ;;  %vm960_vm12 = vweird.f32 %v1587_v31 }
 0x376   : > { %v1012_v37 = vsel %vm1009_vm11, %v1011_v33, %v1007_v35  ;;  %vm961_vm14 = vmor %vm959_vm13, %vm960_vm12 }
 0x377   : > { %v956_v40 = vsub.f32 1.0, %v955_v36  ;;  %v1013_v41 = vmul.f32 %v1581_v18, %v1012_v37 }
 0x379   : > { %v957_v44 = vmul.f32 %v1587_v31, %v956_v40  ;;  %1470 = vmatmul.msk.f32.vlgmr.msra.gmra.mxu2 %vm944_vm7, %v1013_v41  ;;  %v1571_v41 = vld [vmem:[%s2170_s3] ss:$0 sm:$0xff] }
 0x37a   : > { %1144 = vmatpush.xpose.msra.mxu2 %v841_v42  ;;  %v1600_v42 = vld [vmem:[%s2009_s4] sm:$0xff] }
 0x37b   : > { %v958_v47 = vadd.f32 %v1587_v31, %v957_v44 }
 0x37d   : > { %v962_v50 = vsel %vm961_vm14, %v1587_v31, %v958_v47 }
 0x37e   : > { %v967_v51 = vsel %vm964_vm15, %v966_v49, %v962_v50  ;;  %v1262_v50 = vld [vmem:[#allocation8 + $0x78] sm:$0xff] }
 0x37f   : > { %v968_v39 = vmul.f32 %v1583_v20, %v967_v51  ;;  %1267 = vmatpush.msrb.mxu0 %v1262_v50  ;;  %v1261_v51 = vld [vmem:[#allocation8 + $0x70] sm:$0xff] }
 0x381   : > { %1471 = vmatmul.msk.f32.vlgmr.msra.gmra.mxu3 %vm944_vm7, %v968_v39  ;;  %1076 = vmatmul.f32.vlgmr.msrb.gmra.mxu2 %v741_v52  ;;  %v1260_v52 = vld [vmem:[#allocation8 + $0x68] sm:$0xff]  ;;  %v1259_v39 = vld [vmem:[#allocation8 + $0x60] sm:$0xff] }
 0x382   : > { %1192 = vmatpush.msra.mxu3 %v921_v55  ;;  %1268 = vmatpush.msrb.mxu0 %v1261_v51  ;;  %v1258_v55 = vld [vmem:[#allocation8 + $0x58] sm:$0xff]  ;;  %v1575_v51 = vld [vmem:[%s2174_s7] ss:$0 sm:$0xff] }
 0x384   : > { %1269 = vmatpush.msrb.mxu0 %v1260_v52 }
 0x386   : > { %1270 = vmatpush.msrb.mxu0 %v1259_v39 }
 0x388   : > { %1271 = vmatpush.msrb.mxu0 %v1258_v55 }
 0x389   : > { %1145 = vmatmul.f32.vlgmr.msra.gmra.mxu2 %v761_v57  ;;  %v1256_v57 = vld [vmem:[#allocation8 + $0x48] sm:$0xff] }
 0x38a   : > { %1272 = vmatpush.msrb.mxu0 %v1257_v56 }
 0x38c   : > { %1273 = vmatpush.msrb.mxu0 %v1256_v57 }
 0x38e   : > { %1274 = vmatpush.msrb.mxu0 %v1255_v34 }
 0x3fc   : > { %v1034_v54 = vpop.f32.mrf.mxu2 }
 0x404   : > { %v1077_v58 = vpop.f32.mrf.mxu2  ;;  %v1057_v32 = vpop.f32.mrf.mxu3 }
 0x405   : > { %v1080_v59 = vmul.f32 0.35355338, %v1077_v58  ;;  %v1058_v35 = vadd.f32 %v1057_v32, %v1034_v54 }
 0x407   : > { %v1081_v60 = vsel %vm944_vm7, %v1080_v59, -inf }
 0x408   : > { %1082 = vmax.xlane.f32.xlu2 %v1081_v60  ;;  %v1253_v60 = vld [vmem:[#allocation8 + $0x30] sm:$0xff] }
 0x40c   : > { %v1146_v61 = vpop.f32.mrf.mxu2 }
 0x40d   : > { %v1149_v53 = vmul.f32 0.35355338, %v1146_v61  ;;  %v1252_v61 = vld [vmem:[#allocation8 + $0x28] sm:$0xff] }
 0x40f   : > { %v1150_v62 = vsel %vm944_vm7, %v1149_v53, -inf }
 0x410   : > { %1151 = vmax.xlane.f32.xlu0 %v1150_v62 }
 0x47b   : > { %v1083_v63 = vpop.xlane.xlu2 %1082 }
 0x47c   : > { %v1084_v0 = vsub.f32 %v1080_v59, %v1083_v63  ;;  %v1254_v59 = vld [vmem:[#allocation8 + $0x38] sm:$0xff] }
 0x47d   : > { %1275 = vmatpush.msrb.mxu0 %v1254_v59  ;;  %v1250_v63 = vld [vmem:[#allocation8 + $0x18] sm:$0xff] }
 0x47e   : > { %v1085_v1 = vmul.f32 1.442695, %v1084_v0 }
 0x47f   : > { %1276 = vmatpush.msrb.mxu0 %v1253_v60 }
 0x480   : > { %1588 = vpow2.f32 %v1085_v1  ;;  %v1249_v1 = vld [vmem:[#allocation8 + $0x10] sm:$0xff] }
 0x481   : > { %1277 = vmatpush.msrb.mxu0 %v1252_v61 }
 0x483   : > { %v1152_v2 = vpop.xlane.xlu0 %1151 }
 0x484   : > { %v1153_v38 = vsub.f32 %v1149_v53, %v1152_v2  ;;  %v1251_v53 = vld [vmem:[#allocation8 + $0x20] sm:$0xff] }
 0x485   : > { %1278 = vmatpush.msrb.mxu0 %v1251_v53 }
 0x486   : > { %v1589_v4 = vpop.eup %1588  ;;  %v1154_v3 = vmul.f32 1.442695, %v1153_v38  ;;  %v1248_v38 = vld [vmem:[#allocation8 + $0x8] sm:$0xff] }
 0x487   : > { %v1087_v5 = vsel %vm944_vm7, %v1589_v4, 0.0  ;;  %1279 = vmatpush.msrb.mxu0 %v1250_v63 }
 0x488   : > { %1590 = vpow2.f32 %v1154_v3  ;;  %1088 = vadd.xlane.f32.xlu2 %v1087_v5  ;;  %v1247_v3 = vld [vmem:[#allocation8] sm:$0xff]  ;;  %v1303_v5 = vld [vmem:[#allocation10 + $0x78] sm:$0xff] }
 0x489   : > { %1280 = vmatpush.msrb.mxu0 %v1249_v1  ;;  %1308 = vmatpush.msrb.mxu1 %v1303_v5 }
 0x48b   : > { %1281 = vmatpush.msrb.mxu0 %v1248_v38 }
 0x48d   : > { %1282 = vmatpush.msrb.mxu0 %v1247_v3 }
 0x48e   : > { %v1591_v6 = vpop.eup %1590 }
 0x48f   : > { %v1156_v7 = vsel %vm944_vm7, %v1591_v6, 0.0 }
 0x490   : > { %1157 = vadd.xlane.f32.xlu0 %v1156_v7 }
 0x4fb   : > { %v1089_v8 = vpop.xlane.xlu2 %1088 }
 0x4fc   : > { %1592 = vrcp.f32 %v1089_v8  ;;  %v1101_v13 = vand.u32 2147483648, %v1089_v8  ;;  %v1099_v15 = vand.u32 2147483647, %v1089_v8  ;;  %vm1095_vm2 = vweird.f32 %v1089_v8 }
 0x4fe   : > { %v1102_v18 = vor.u32 1.1754944e-38, %v1101_v13  ;;  %vm1100_vm4 = vcmp.eq.f32.partialorder %v1099_v15, 8.507059e+37  ;;  %v1299_v13 = vld [vmem:[#allocation10 + $0x58] sm:$0xff] }
 0x502   : > { %v1593_v9 = vpop.eup %1592 }
 0x503   : > { %v1091_v10 = vmul.f32 %v1593_v9, %v1089_v8  ;;  %v1158_v11 = vpop.xlane.xlu0 %1157  ;;  %vm1096_vm1 = vweird.f32 %v1593_v9  ;;  %v1301_v8 = vld [vmem:[#allocation10 + $0x68] sm:$0xff] }
 0x504   : > { %1594 = vrcp.f32 %v1158_v11  ;;  %vm1097_vm3 = vmor %vm1095_vm2, %vm1096_vm1  ;;  %v1170_v24 = vand.u32 2147483648, %v1158_v11  ;;  %v1168_v26 = vand.u32 2147483647, %v1158_v11  ;;  %vm1164_vm6 = vweird.f32 %v1158_v11 }
 0x505   : > { %v1092_v12 = vsub.f32 1.0, %v1091_v10  ;;  %v1300_v10 = vld [vmem:[#allocation10 + $0x60] sm:$0xff] }
 0x506   : > { %v1171_v28 = vor.u32 1.1754944e-38, %v1170_v24  ;;  %vm1169_vm9 = vcmp.eq.f32.partialorder %v1168_v26, 8.507059e+37  ;;  %v1293_v24 = vld [vmem:[#allocation10 + $0x28] sm:$0xff]  ;;  %v1292_v26 = vld [vmem:[#allocation10 + $0x20] sm:$0xff] }
 0x507   : > { %v1093_v14 = vmul.f32 %v1593_v9, %v1092_v12 }
 0x509   : > { %v1094_v16 = vadd.f32 %v1593_v9, %v1093_v14 }
 0x50a   : > { %v1595_v17 = vpop.eup %1594 }
 0x50b   : > { %v1098_v19 = vsel %vm1097_vm3, %v1593_v9, %v1094_v16  ;;  %v1160_v20 = vmul.f32 %v1595_v17, %v1158_v11  ;;  %vm1165_vm5 = vweird.f32 %v1595_v17  ;;  %v1298_v16 = vld [vmem:[#allocation10 + $0x50] sm:$0xff] }
 0x50c   : > { %v1103_v21 = vsel %vm1100_vm4, %v1102_v18, %v1098_v19  ;;  %vm1166_vm8 = vmor %vm1164_vm6, %vm1165_vm5  ;;  %v1297_v18 = vld [vmem:[#allocation10 + $0x48] sm:$0xff]  ;;  %v1296_v19 = vld [vmem:[#allocation10 + $0x40] sm:$0xff] }
 0x50d   : > { %v1161_v22 = vsub.f32 1.0, %v1160_v20  ;;  %v1104_v23 = vmul.f32 %v1589_v4, %v1103_v21  ;;  %v1295_v20 = vld [vmem:[#allocation10 + $0x38] sm:$0xff]  ;;  %v1294_v21 = vld [vmem:[#allocation10 + $0x30] sm:$0xff] }
 0x50f   : > { %v1162_v25 = vmul.f32 %v1595_v17, %v1161_v22  ;;  %1472 = vmatmul.msk.f32.vlgmr.msrb.gmra.mxu3 %vm944_vm7, %v1104_v23 }
 0x511   : > { %v1163_v27 = vadd.f32 %v1595_v17, %v1162_v25 }
 0x513   : > { %v1167_v29 = vsel %vm1166_vm8, %v1595_v17, %v1163_v27 }
 0x514   : > { %v1172_v30 = vsel %vm1169_vm9, %v1171_v28, %v1167_v29  ;;  %v1572_v28 = vld [vmem:[%s2175_s8 + $0x2] ss:$0 sm:$0xff] }
 0x515   : > { %v1173_v31 = vmul.f32 %v1591_v6, %v1172_v30  ;;  %v1302_v6 = vld [vmem:[#allocation10 + $0x70] sm:$0xff] }
 0x516   : > { %1309 = vmatpush.msrb.mxu1 %v1302_v6 }
 0x517   : > { %1473 = vmatmul.msk.f32.vlgmr.msra.gmra.mxu3 %vm944_vm7, %v1173_v31  ;;  %v1291_v31 = vld [vmem:[#allocation10 + $0x18] sm:$0xff] }
 0x518   : > { %1310 = vmatpush.msrb.mxu1 %v1301_v8 }
 0x51a   : > { %1311 = vmatpush.msrb.mxu1 %v1300_v10 }
 0x51c   : > { %1312 = vmatpush.msrb.mxu1 %v1299_v13 }
 0x51e   : > { %1313 = vmatpush.msrb.mxu1 %v1298_v16 }
 0x520   : > { %1314 = vmatpush.msrb.mxu1 %v1297_v18 }
 0x522   : > { %1315 = vmatpush.msrb.mxu1 %v1296_v19 }
 0x524   : > { %1316 = vmatpush.msrb.mxu1 %v1295_v20 }
 0x526   : > { %1317 = vmatpush.msrb.mxu1 %v1294_v21 }
 0x528   : > { %1318 = vmatpush.msrb.mxu1 %v1293_v24 }
 0x52a   : > { %1319 = vmatpush.msrb.mxu1 %v1292_v26 }
 0x52c   : > { %1320 = vmatpush.msrb.mxu1 %v1291_v31 }
 0x592   : > { %v1125_v33 = vpop.f32.mrf.mxu3 }
 0x593   : > { %v1128_v36 = vadd.f32 %v1125_v33, %v1058_v35 }
 0x59a   : > { %v1194_v37 = vpop.f32.mrf.mxu3 }
 0x59b   : > { %v1197_v40 = vadd.f32 %v1194_v37, %v1128_v36  ;;  %v1573_v37 = vld [vmem:[%s2175_s8 + $0x3] ss:$0 sm:$0xff] }
 0x59d   : > { %v1198_v43 = vadd.f32 %v1600_v42, %v1197_v40 }
 0x59f   : > { %v2108_v44 = vadd.f32 %v1571_v41, %v1198_v43  ;;  %v1290_v43 = vld [vmem:[#allocation10 + $0x10] sm:$0xff] }
 0x5a0   : > { %1321 = vmatpush.msrb.mxu1 %v1290_v43 }
 0x5a1   : > { %1206 = vadd.xlane.f32.xlu1 %v2108_v44 }
 0x614   : > { %v1207_v45 = vpop.xlane.xlu1 %1206 }
 0x615   : > { %v1208_v46 = vmul.f32 0.03125, %v1207_v45  ;;  %v1289_v45 = vld [vmem:[#allocation10 + $0x8] sm:$0xff] }
 0x616   : > { %1322 = vmatpush.msrb.mxu1 %v1289_v45 }
 0x617   : > { %v1209_v47 = vsub.f32 %v2108_v44, %v1208_v46  ;;  %v1288_v46 = vld [vmem:[#allocation10] sm:$0xff] }
 0x618   : > { %1323 = vmatpush.msrb.mxu1 %v1288_v46 }
 0x619   : > { %v2114_v48 = vsel %vm417_vm0, %v1209_v47, 0.0  ;;  %v1574_v47 = vld [vmem:[%s2172_s5] ss:$0 sm:$0xff] }
 0x61a   : > { %v1211_v49 = vmul.f32 %v2114_v48, %v2114_v48  ;;  %v1243_v35 = vmul.f32 %v1572_v28, %v2114_v48 }
 0x61c   : > { %1212 = vadd.xlane.f32.xlu2 %v1211_v49 }
 0x68f   : > { %v1213_v54 = vpop.xlane.xlu2 %1212 }
 0x690   : > { %v1214_v58 = vmul.f32 0.032258064, %v1213_v54 }
 0x692   : > { %1596 = vrsqrt.f32 %v1214_v58  ;;  %vm1222_vm0 = vcmp.eq.f32.partialorder %v1214_v58, inf  ;;  %v1225_v12 = vand.u32 2147483648, %v1214_v58  ;;  %vm1224_vm7 = vcmp.eq.f32.partialorder %v1214_v58, 0.0 }
 0x698   : > { %v1597_v62 = vpop.eup %1596 }
 0x699   : > { %v1216_v0 = vmul.f32 %v1597_v62, %v1214_v58 }
 0x69b   : > { %v1217_v2 = vmul.f32 %v1597_v62, %v1216_v0 }
 0x69d   : > { %v1218_v4 = vmul.f32 0.5, %v1217_v2 }
 0x69f   : > { %v1219_v7 = vsub.f32 1.5, %v1218_v4 }
 0x6a1   : > { %v1220_v9 = vmul.f32 %v1597_v62, %v1219_v7 }
 0x6a3   : > { %v1221_v11 = vmul.f32 %v1220_v9, %v1214_v58 }
 0x6a5   : > { %v1223_v14 = vsel %vm1222_vm0, %v1214_v58, %v1221_v11 }
 0x6a6   : > { %v1226_v15 = vsel %vm1224_vm7, %v1225_v12, %v1223_v14 }
 0x6a7   : > { %v1227_v17 = vadd.f32 1e-06, %v1226_v15 }
 0x6a9   : > { %1598 = vrcp.f32 %v1227_v17  ;;  %v1239_v27 = vand.u32 2147483648, %v1227_v17  ;;  %v1237_v30 = vand.u32 2147483647, %v1227_v17  ;;  %vm1233_vm11 = vweird.f32 %v1227_v17 }
 0x6ab   : > { %v1240_v33 = vor.u32 1.1754944e-38, %v1239_v27  ;;  %vm1238_vm13 = vcmp.eq.f32.partialorder %v1237_v30, 8.507059e+37 }
 0x6af   : > { %v1599_v22 = vpop.eup %1598 }
 0x6b0   : > { %v1229_v23 = vmul.f32 %v1599_v22, %v1227_v17  ;;  %vm1234_vm10 = vweird.f32 %v1599_v22 }
 0x6b1   : > { %vm1235_vm12 = vmor %vm1233_vm11, %vm1234_vm10 }
 0x6b2   : > { %v1230_v25 = vsub.f32 1.0, %v1229_v23 }
 0x6b4   : > { %v1231_v29 = vmul.f32 %v1599_v22, %v1230_v25 }
 0x6b6   : > { %v1232_v32 = vadd.f32 %v1599_v22, %v1231_v29 }
 0x6b8   : > { %v1236_v36 = vsel %vm1235_vm12, %v1599_v22, %v1232_v32 }
 0x6b9   : > { %v1241_v40 = vsel %vm1238_vm13, %v1240_v33, %v1236_v36 }
 0x6ba   : > { %v1244_v41 = vmul.f32 %v1243_v35, %v1241_v40 }
 0x6bc   : > { %v1246_v42 = vadd.f32 %v1573_v37, %v1244_v41 }
 0x6be   : > { %1283 = vmatmul.f32.vlgmr.msrb.gmra.mxu0 %v1246_v42 }
 0x73b   : > { %v1284_v48 = vpop.f32.mrf.mxu0 }
 0x73c   : > { %v1285_v49 = vadd.f32 %v1574_v47, %v1284_v48 }
 0x73e   : > { %v1287_v50 = vmax.f32 %v1285_v49, 0.0 }
 0x740   : > { %1324 = vmatmul.f32.vlgmr.msrb.gmra.mxu1 %v1287_v50 }
 0x7bd   : > { %v1325_v52 = vpop.f32.mrf.mxu1 }
 0x7be   : > { %v1326_v39 = vadd.f32 %v1575_v51, %v1325_v52 }
 0x7c0   : > { %v1328_v55 = vadd.f32 %v1326_v39, %v2108_v44 }
 0x7c2   : > { %1329 = vst [vmem:[%s413_s23] sm:$0xff] %v1328_v55 }
 0x7c3   : > { %1778 = shalt.err (!%p1775_p9)
}
 0x7c4   : > { %1496 = dma.vmem_to_hbm [thread:$0]  (%p1972_p4), %s1344_s14, 128, %s1346_s26, %s1331_s16  }
 0x7c5 PF: > { %s1357_s28 = sand.u32 1, %s1813_s30   ;;  %p2192_p10 = scmp.ge.s32.totalorder %s1825_s12, 2 }
 0x7c6   : > { %s1358_s4 = scalar_lea.sflag [#allocation4], %s1357_s28 }
 0x7c7   : > { %p1516_p13 = pnand %p2192_p10, %p1976_p6 }
 0x7c9   : > { %p1517_p11 = pneg %p1516_p13 }
 0x7cb   : > { %1808 = dma.done.wait (%p1517_p11), %s1358_s4, 128  }
 0x7cc   : > { %1810 = vsyncadd (%p1517_p11), %s1358_s4, 4294967168  ;;  %p24_p0 = scmp.ge.s32.totalorder %s1946_s27, 4   ;;  %s2193_s30 = smov %s1817_s10 }
 0x7cd   : > { %s2194_s10 = smov %s1821_s11  ;;  %s2195_s11 = smov %s1957_s18 }
 0x7ce   : > { %s2196_s12 = smov %s1946_s27  ;;  %26 = sbr.rel (!%p24_p0) target bundleno = 12 (0xc), region = 117 }
 0x7d3   :  { %1364 = vsyncpa [#allocation3], 1 }
 0x7d4   :  { %1366 = vsyncpa [#allocation3 + $0x1], 1 }
 0x7d5   :  { %1367 = vsyncpa [#allocation6], 1 }
 0x7d6   :  { %1368 = vsyncpa [#allocation9], 1 }
 0x7d7   :  { %1369 = vsyncpa [#allocation4], 1 }
 0x7d8   :  { %1371 = vsyncpa [#allocation4 + $0x1], 1 }

</bundles_post_ra>
